<compile_context>
chip_gen: v7x
topology: tpu7x:2x2x1
jax: 0.10.0
libtpu: 0.0.40
codegen_flags: <defaults>
</compile_context>

<pallas_src>
import functools
import math

import jax
import jax.numpy as jnp
from jax.experimental import pallas as pl
from jax.experimental.pallas import tpu as pltpu


# --------------------------- fused Pallas kernel ---------------------------

def _decoder_block_kernel(
    x_ref, v_ref, k_ref, trg_mask_ref, src_mask_ref,
    a1_wv_ref, a1_wk_ref, a1_wq_ref, a1_wo_ref, norm_g_ref, norm_b_ref,
    a2_wv_ref, a2_wk_ref, a2_wq_ref, a2_wo_ref, norm1_g_ref, norm1_b_ref,
    ff_w1_ref, ff_b1_ref, ff_w2_ref, ff_b2_ref, norm2_g_ref, norm2_b_ref,
    o_ref, concat_ref,
    *, heads, head_dim, embed_size, eps):

    inv_scale = 1.0 / (embed_size ** 0.5)

    def attention(q, k, v, mask, wq_bd, wk_bd, wv_bd, wo_t):
        # Batched E-wide projections (block-diagonal weights == shared per-head Linear).
        qh = jnp.dot(q, wq_bd, preferred_element_type=jnp.float32)   # (Lq, E)
        kh = jnp.dot(k, wk_bd, preferred_element_type=jnp.float32)   # (Lk, E)
        vh = jnp.dot(v, wv_bd, preferred_element_type=jnp.float32)   # (Lk, E)
        is_masked = mask == 0.0                                      # hoisted compare
        for h in range(heads):                                       # static, unrolled
            lo = h * head_dim
            q_h = qh[:, lo:lo + head_dim]
            k_h = kh[:, lo:lo + head_dim]
            v_h = vh[:, lo:lo + head_dim]
            # q_h @ k_h.T without an explicit in-kernel transpose
            energy = jax.lax.dot_general(
                q_h, k_h, (((1,), (1,)), ((), ())),
                preferred_element_type=jnp.float32)                  # (Lq, Lk)
            # masked_fill BEFORE scaling, exactly like the PyTorch reference
            energy = jnp.where(is_masked, jnp.float32(-1e20), energy) * inv_scale
            m = jnp.max(energy, axis=-1, keepdims=True)
            p = jnp.exp(energy - m)
            denom = jnp.sum(p, axis=-1, keepdims=True)
            attn = p * pl.reciprocal(denom, approx=False)
            # write head output directly into the resident VMEM slab (no concatenate)
            concat_ref[:, lo:lo + head_dim] = jnp.dot(
                attn, v_h, preferred_element_type=jnp.float32)
        return jnp.dot(concat_ref[...], wo_t, preferred_element_type=jnp.float32)

    def add_layernorm(a, b, g, beta):
        s = a + b
        mean = jnp.mean(s, axis=-1, keepdims=True)
        var = jnp.mean(jnp.square(s - mean), axis=-1, keepdims=True)
        return (s - mean) * jax.lax.rsqrt(var + eps) * g + beta

    x = x_ref[0].astype(jnp.float32)      # (Lq, E)
    val = v_ref[0].astype(jnp.float32)    # (Lk, E)
    key = k_ref[0].astype(jnp.float32)    # (Lk, E)

    # masked self-attention + add & norm (dropout == identity in eval mode)
    attn1 = attention(x, x, x, trg_mask_ref[0],
                      a1_wq_ref[...], a1_wk_ref[...], a1_wv_ref[...], a1_wo_ref[...])
    query = add_layernorm(attn1, x, norm_g_ref[...], norm_b_ref[...])

    # cross-attention (TransformerBlock.attention(value, key, query, src_mask))
    attn2 = attention(query, key, val, src_mask_ref[0],
                      a2_wq_ref[...], a2_wk_ref[...], a2_wv_ref[...], a2_wo_ref[...])
    x2 = add_layernorm(attn2, query, norm1_g_ref[...], norm1_b_ref[...])

    # feed-forward (Linear -> ReLU -> Linear) + add & norm
    h1 = jnp.maximum(
        jnp.dot(x2, ff_w1_ref[...], preferred_element_type=jnp.float32) + ff_b1_ref[...],
        0.0)
    ff = jnp.dot(h1, ff_w2_ref[...], preferred_element_type=jnp.float32) + ff_b2_ref[...]
    out = add_layernorm(ff, x2, norm2_g_ref[...], norm2_b_ref[...])

    o_ref[0] = out.astype(o_ref.dtype)


# --------------------------- host-side helpers & wrapper ---------------------------

def _block_diag_t(w, heads):
    """Block-diagonal embedding of W.T (head-shared Linear -> one E-wide matmul)."""
    wt = w.T
    hd = wt.shape[0]
    E = hd * heads
    bd = jnp.zeros((E, E), wt.dtype)
    for h in range(heads):
        bd = bd.at[h * hd:(h + 1) * hd, h * hd:(h + 1) * hd].set(wt)
    return bd


def decoder_block_pallas(x, value, key_t, src_mask, trg_mask, p, heads):
    N, Lq, E = x.shape
    Lk = value.shape[1]
    hd = E // heads
    H = p['ff_w1'].shape[0]

    # Pre-transposed / block-diagonal weights built once on the host (trace time).
    a1_wv = _block_diag_t(p['a1_wv'], heads)
    a1_wk = _block_diag_t(p['a1_wk'], heads)
    a1_wq = _block_diag_t(p['a1_wq'], heads)
    a1_wo = p['a1_wo'].T
    a2_wv = _block_diag_t(p['a2_wv'], heads)
    a2_wk = _block_diag_t(p['a2_wk'], heads)
    a2_wq = _block_diag_t(p['a2_wq'], heads)
    a2_wo = p['a2_wo'].T
    ff_w1_t = p['ff_w1'].T                      # (E, H)
    ff_w2_t = p['ff_w2'].T                      # (H, E)
    ff_b1 = p['ff_b1'].reshape(1, H)
    ff_b2 = p['ff_b2'].reshape(1, E)
    norm_g = p['norm_g'].reshape(1, E)
    norm_b = p['norm_b'].reshape(1, E)
    norm1_g = p['norm1_g'].reshape(1, E)
    norm1_b = p['norm1_b'].reshape(1, E)
    norm2_g = p['norm2_g'].reshape(1, E)
    norm2_b = p['norm2_b'].reshape(1, E)

    kernel = functools.partial(_decoder_block_kernel,
                               heads=heads, head_dim=hd, embed_size=E, eps=1e-5)

    w_spec = pl.BlockSpec((E, E), lambda n: (0, 0))
    v_spec = pl.BlockSpec((1, E), lambda n: (0, 0))

    return pl.pallas_call(
        kernel,
        out_shape=jax.ShapeDtypeStruct((N, Lq, E), x.dtype),
        grid=(N,),
        in_specs=[
            pl.BlockSpec((1, Lq, E), lambda n: (n, 0, 0)),    # x
            pl.BlockSpec((1, Lk, E), lambda n: (n, 0, 0)),    # value
            pl.BlockSpec((1, Lk, E), lambda n: (n, 0, 0)),    # key
            pl.BlockSpec((1, Lq, Lq), lambda n: (n, 0, 0)),   # trg_mask
            pl.BlockSpec((1, Lq, Lk), lambda n: (n, 0, 0)),   # src_mask
            w_spec, w_spec, w_spec, w_spec,                   # a1 wv, wk, wq, wo
            v_spec, v_spec,                                   # norm g, b
            w_spec, w_spec, w_spec, w_spec,                   # a2 wv, wk, wq, wo
            v_spec, v_spec,                                   # norm1 g, b
            pl.BlockSpec((E, H), lambda n: (0, 0)),           # ff_w1.T
            pl.BlockSpec((1, H), lambda n: (0, 0)),           # ff_b1
            pl.BlockSpec((H, E), lambda n: (0, 0)),           # ff_w2.T
            pl.BlockSpec((1, E), lambda n: (0, 0)),           # ff_b2
            v_spec, v_spec,                                   # norm2 g, b
        ],
        out_specs=pl.BlockSpec((1, Lq, E), lambda n: (n, 0, 0)),
        scratch_shapes=[pltpu.VMEM((Lq, E), jnp.float32)],    # head-concat slab
        compiler_params=pltpu.CompilerParams(
            dimension_semantics=("parallel",),
            vmem_limit_bytes=32 * 1024 * 1024),
    )(x, value, key_t, trg_mask, src_mask,
      a1_wv, a1_wk, a1_wq, a1_wo, norm_g, norm_b,
      a2_wv, a2_wk, a2_wq, a2_wo, norm1_g, norm1_b,
      ff_w1_t, ff_b1, ff_w2_t, ff_b2, norm2_g, norm2_b)


# --------------------------- pure-JAX reference ---------------------------

def _self_attention_ref(values, keys_, query, mask, wv, wk, wq, wo, heads):
    N, Lq, E = query.shape
    hd = E // heads
    v = values.reshape(N, -1, heads, hd) @ wv.T
    k = keys_.reshape(N, -1, heads, hd) @ wk.T
    q = query.reshape(N, Lq, heads, hd) @ wq.T
    energy = jnp.einsum('nqhd,nkhd->nhqk', q, k)
    energy = jnp.where(mask[:, None, :, :] == 0, jnp.float32(-1e20), energy)
    attn = jax.nn.softmax(energy / (E ** 0.5), axis=3)
    out = jnp.einsum('nhql,nlhd->nqhd', attn, v).reshape(N, Lq, E)
    return out @ wo.T


def _layernorm_ref(x, g, b, eps=1e-5):
    mean = jnp.mean(x, -1, keepdims=True)
    var = jnp.mean((x - mean) ** 2, -1, keepdims=True)
    return (x - mean) / jnp.sqrt(var + eps) * g + b


def decoder_block_ref(x, value, key_t, src_mask, trg_mask, p, heads):
    attn1 = _self_attention_ref(x, x, x, trg_mask,
                                p['a1_wv'], p['a1_wk'], p['a1_wq'], p['a1_wo'], heads)
    query = _layernorm_ref(attn1 + x, p['norm_g'], p['norm_b'])
    attn2 = _self_attention_ref(value, key_t, query, src_mask,
                                p['a2_wv'], p['a2_wk'], p['a2_wq'], p['a2_wo'], heads)
    x2 = _layernorm_ref(attn2 + query, p['norm1_g'], p['norm1_b'])
    ff = jnp.maximum(x2 @ p['ff_w1'].T + p['ff_b1'], 0.0) @ p['ff_w2'].T + p['ff_b2']
    return _layernorm_ref(ff + x2, p['norm2_g'], p['norm2_b'])


# --------------------------- parameter init ---------------------------

def init_params(key, embed_size, heads, forward_expansion):
    hd = embed_size // heads
    hidden = forward_expansion * embed_size
    ks = jax.random.split(key, 12)

    def lin_w(k, out_f, in_f):
        bound = 1.0 / math.sqrt(in_f)
        return jax.random.uniform(k, (out_f, in_f), jnp.float32, -bound, bound)

    def lin_b(k, out_f, in_f):
        bound = 1.0 / math.sqrt(in_f)
        return jax.random.uniform(k, (out_f,), jnp.float32, -bound, bound)

    return {
        # DecoderBlock.attention (masked self-attention)
        'a1_wv': lin_w(ks[0], hd, hd), 'a1_wk': lin_w(ks[1], hd, hd),
        'a1_wq': lin_w(ks[2], hd, hd), 'a1_wo': lin_w(ks[3], embed_size, embed_size),
        'norm_g': jnp.ones((embed_size,), jnp.float32),
        'norm_b': jnp.zeros((embed_size,), jnp.float32),
        # TransformerBlock.attention (cross-attention)
        'a2_wv': lin_w(ks[4], hd, hd), 'a2_wk': lin_w(ks[5], hd, hd),
        'a2_wq': lin_w(ks[6], hd, hd), 'a2_wo': lin_w(ks[7], embed_size, embed_size),
        'norm1_g': jnp.ones((embed_size,), jnp.float32),
        'norm1_b': jnp.zeros((embed_size,), jnp.float32),
        'norm2_g': jnp.ones((embed_size,), jnp.float32),
        'norm2_b': jnp.zeros((embed_size,), jnp.float32),
        # feed-forward
        'ff_w1': lin_w(ks[8], hidden, embed_size),
        'ff_b1': lin_b(ks[9], hidden, embed_size),
        'ff_w2': lin_w(ks[10], embed_size, hidden),
        'ff_b2': lin_b(ks[11], embed_size, hidden),
    }


# --------------------------- main ---------------------------

if __name__ == "__main__":
    N, L, E, HEADS, FE = 2, 8, 32, 4, 4

    root = jax.random.PRNGKey(0)
    kx, kv, kk, kp = jax.random.split(root, 4)
    x = jax.random.normal(kx, (N, L, E), jnp.float32)
    value = jax.random.normal(kv, (N, L, E), jnp.float32)
    key_t = jax.random.normal(kk, (N, L, E), jnp.float32)

    # causal mask for the decoder self-attention, all-ones mask for cross-attention
    trg_mask = jnp.broadcast_to(jnp.tril(jnp.ones((L, L), jnp.float32)), (N, L, L))
    src_mask = jnp.ones((N, L, L), jnp.float32)

    params = init_params(kp, E, HEADS, FE)

    out = decoder_block_pallas(x, value, key_t, src_mask, trg_mask, params, HEADS)
    out = jax.block_until_ready(out)

    ref = decoder_block_ref(x, value, key_t, src_mask, trg_mask, params, HEADS)
    assert out.shape == (N, L, E)
    assert jnp.allclose(out, ref, atol=1e-3, rtol=1e-3), float(jnp.max(jnp.abs(out - ref)))

    print("KERNEL_OK")
</pallas_src>

<mosaic_0001>
module attributes {stable_mosaic.version = 11 : i64} {
  func.func @_decoder_block_kernel(%arg0: i32, %arg1: memref<1x8x32xf32, #tpu.memory_space<vmem>>, %arg2: memref<1x8x32xf32, #tpu.memory_space<vmem>>, %arg3: memref<1x8x32xf32, #tpu.memory_space<vmem>>, %arg4: memref<1x8x8xf32, #tpu.memory_space<vmem>>, %arg5: memref<1x8x8xf32, #tpu.memory_space<vmem>>, %arg6: memref<32x32xf32, #tpu.memory_space<vmem>>, %arg7: memref<32x32xf32, #tpu.memory_space<vmem>>, %arg8: memref<32x32xf32, #tpu.memory_space<vmem>>, %arg9: memref<32x32xf32, #tpu.memory_space<vmem>>, %arg10: memref<1x32xf32, #tpu.memory_space<vmem>>, %arg11: memref<1x32xf32, #tpu.memory_space<vmem>>, %arg12: memref<32x32xf32, #tpu.memory_space<vmem>>, %arg13: memref<32x32xf32, #tpu.memory_space<vmem>>, %arg14: memref<32x32xf32, #tpu.memory_space<vmem>>, %arg15: memref<32x32xf32, #tpu.memory_space<vmem>>, %arg16: memref<1x32xf32, #tpu.memory_space<vmem>>, %arg17: memref<1x32xf32, #tpu.memory_space<vmem>>, %arg18: memref<32x128xf32, #tpu.memory_space<vmem>>, %arg19: memref<1x128xf32, #tpu.memory_space<vmem>>, %arg20: memref<128x32xf32, #tpu.memory_space<vmem>>, %arg21: memref<1x32xf32, #tpu.memory_space<vmem>>, %arg22: memref<1x32xf32, #tpu.memory_space<vmem>>, %arg23: memref<1x32xf32, #tpu.memory_space<vmem>>, %arg24: memref<1x8x32xf32, #tpu.memory_space<vmem>>, %arg25: memref<8x32xf32, #tpu.memory_space<vmem>>) attributes {dimension_semantics = [#tpu.dimension_semantics<parallel>], iteration_bounds = array<i64: 2>, scalar_prefetch = 0 : i64, scratch_operands = 1 : i64, tpu.core_type = #tpu.core_type<tc>, window_params = [{transform_indices = @transform_0, window_bounds = array<i64: 1, 8, 32>}, {transform_indices = @transform_1, window_bounds = array<i64: 1, 8, 32>}, {transform_indices = @transform_2, window_bounds = array<i64: 1, 8, 32>}, {transform_indices = @transform_3, window_bounds = array<i64: 1, 8, 8>}, {transform_indices = @transform_4, window_bounds = array<i64: 1, 8, 8>}, {pipeline_mode = #tpu.pipeline_mode<synchronous>, transform_indices = @transform_5, window_bounds = array<i64: 32, 32>}, {pipeline_mode = #tpu.pipeline_mode<synchronous>, transform_indices = @transform_6, window_bounds = array<i64: 32, 32>}, {pipeline_mode = #tpu.pipeline_mode<synchronous>, transform_indices = @transform_7, window_bounds = array<i64: 32, 32>}, {pipeline_mode = #tpu.pipeline_mode<synchronous>, transform_indices = @transform_8, window_bounds = array<i64: 32, 32>}, {pipeline_mode = #tpu.pipeline_mode<synchronous>, transform_indices = @transform_9, window_bounds = array<i64: 1, 32>}, {pipeline_mode = #tpu.pipeline_mode<synchronous>, transform_indices = @transform_10, window_bounds = array<i64: 1, 32>}, {pipeline_mode = #tpu.pipeline_mode<synchronous>, transform_indices = @transform_11, window_bounds = array<i64: 32, 32>}, {pipeline_mode = #tpu.pipeline_mode<synchronous>, transform_indices = @transform_12, window_bounds = array<i64: 32, 32>}, {pipeline_mode = #tpu.pipeline_mode<synchronous>, transform_indices = @transform_13, window_bounds = array<i64: 32, 32>}, {pipeline_mode = #tpu.pipeline_mode<synchronous>, transform_indices = @transform_14, window_bounds = array<i64: 32, 32>}, {pipeline_mode = #tpu.pipeline_mode<synchronous>, transform_indices = @transform_15, window_bounds = array<i64: 1, 32>}, {pipeline_mode = #tpu.pipeline_mode<synchronous>, transform_indices = @transform_16, window_bounds = array<i64: 1, 32>}, {pipeline_mode = #tpu.pipeline_mode<synchronous>, transform_indices = @transform_17, window_bounds = array<i64: 32, 128>}, {pipeline_mode = #tpu.pipeline_mode<synchronous>, transform_indices = @transform_18, window_bounds = array<i64: 1, 128>}, {pipeline_mode = #tpu.pipeline_mode<synchronous>, transform_indices = @transform_19, window_bounds = array<i64: 128, 32>}, {pipeline_mode = #tpu.pipeline_mode<synchronous>, transform_indices = @transform_20, window_bounds = array<i64: 1, 32>}, {pipeline_mode = #tpu.pipeline_mode<synchronous>, transform_indices = @transform_21, window_bounds = array<i64: 1, 32>}, {pipeline_mode = #tpu.pipeline_mode<synchronous>, transform_indices = @transform_22, window_bounds = array<i64: 1, 32>}, {transform_indices = @transform_23, window_bounds = array<i64: 1, 8, 32>}]} {
    %c0 = arith.constant 0 : index
    %c0_0 = arith.constant 0 : index
    %c0_1 = arith.constant 0 : index
    %0 = vector.load %arg1[%c0, %c0_0, %c0_1] : memref<1x8x32xf32, #tpu.memory_space<vmem>>, vector<1x8x32xf32>
    %1 = vector.shape_cast %0 : vector<1x8x32xf32> to vector<8x32xf32>
    %c0_2 = arith.constant 0 : index
    %c0_3 = arith.constant 0 : index
    %c0_4 = arith.constant 0 : index
    %2 = vector.load %arg2[%c0_2, %c0_3, %c0_4] : memref<1x8x32xf32, #tpu.memory_space<vmem>>, vector<1x8x32xf32>
    %3 = vector.shape_cast %2 : vector<1x8x32xf32> to vector<8x32xf32>
    %c0_5 = arith.constant 0 : index
    %c0_6 = arith.constant 0 : index
    %c0_7 = arith.constant 0 : index
    %4 = vector.load %arg3[%c0_5, %c0_6, %c0_7] : memref<1x8x32xf32, #tpu.memory_space<vmem>>, vector<1x8x32xf32>
    %5 = vector.shape_cast %4 : vector<1x8x32xf32> to vector<8x32xf32>
    %c0_8 = arith.constant 0 : index
    %c0_9 = arith.constant 0 : index
    %c0_10 = arith.constant 0 : index
    %6 = vector.load %arg4[%c0_8, %c0_9, %c0_10] : memref<1x8x8xf32, #tpu.memory_space<vmem>>, vector<1x8x8xf32>
    %7 = vector.shape_cast %6 : vector<1x8x8xf32> to vector<8x8xf32>
    %c0_11 = arith.constant 0 : index
    %c0_12 = arith.constant 0 : index
    %8 = vector.load %arg8[%c0_11, %c0_12] : memref<32x32xf32, #tpu.memory_space<vmem>>, vector<32x32xf32>
    %c0_13 = arith.constant 0 : index
    %c0_14 = arith.constant 0 : index
    %9 = vector.load %arg7[%c0_13, %c0_14] : memref<32x32xf32, #tpu.memory_space<vmem>>, vector<32x32xf32>
    %c0_15 = arith.constant 0 : index
    %c0_16 = arith.constant 0 : index
    %10 = vector.load %arg6[%c0_15, %c0_16] : memref<32x32xf32, #tpu.memory_space<vmem>>, vector<32x32xf32>
    %c0_17 = arith.constant 0 : index
    %c0_18 = arith.constant 0 : index
    %11 = vector.load %arg9[%c0_17, %c0_18] : memref<32x32xf32, #tpu.memory_space<vmem>>, vector<32x32xf32>
    %cst = arith.constant dense<0.000000e+00> : vector<8x32xf32>
    %12 = tpu.matmul %1, %8, %cst {dimension_numbers = #tpu.dot_dimension_numbers<[1], [0], [0], [1], [0, 0, 1, 1], [], []>} : vector<8x32xf32>, vector<32x32xf32>, vector<8x32xf32> -> vector<8x32xf32>
    %cst_19 = arith.constant dense<0.000000e+00> : vector<8x32xf32>
    %13 = tpu.matmul %1, %9, %cst_19 {dimension_numbers = #tpu.dot_dimension_numbers<[1], [0], [0], [1], [0, 0, 1, 1], [], []>} : vector<8x32xf32>, vector<32x32xf32>, vector<8x32xf32> -> vector<8x32xf32>
    %cst_20 = arith.constant dense<0.000000e+00> : vector<8x32xf32>
    %14 = tpu.matmul %1, %10, %cst_20 {dimension_numbers = #tpu.dot_dimension_numbers<[1], [0], [0], [1], [0, 0, 1, 1], [], []>} : vector<8x32xf32>, vector<32x32xf32>, vector<8x32xf32> -> vector<8x32xf32>
    %cst_21 = arith.constant 0.000000e+00 : f32
    %15 = vector.broadcast %cst_21 : f32 to vector<8x8xf32>
    %16 = arith.cmpf oeq, %7, %15 : vector<8x8xf32>
    %17 = vector.extract_strided_slice %12 {offsets = [0, 0], sizes = [8, 8], strides = [1, 1]} : vector<8x32xf32> to vector<8x8xf32>
    %18 = vector.extract_strided_slice %13 {offsets = [0, 0], sizes = [8, 8], strides = [1, 1]} : vector<8x32xf32> to vector<8x8xf32>
    %19 = vector.extract_strided_slice %14 {offsets = [0, 0], sizes = [8, 8], strides = [1, 1]} : vector<8x32xf32> to vector<8x8xf32>
    %cst_22 = arith.constant dense<0.000000e+00> : vector<8x8xf32>
    %20 = tpu.matmul %17, %18, %cst_22 {dimension_numbers = #tpu.dot_dimension_numbers<[1], [1], [0], [0], [0, 0, 1, 0], [], []>} : vector<8x8xf32>, vector<8x8xf32>, vector<8x8xf32> -> vector<8x8xf32>
    %cst_23 = arith.constant -1.000000e+20 : f32
    %21 = vector.broadcast %cst_23 : f32 to vector<8x8xf32>
    %22 = arith.select %16, %21, %20 : vector<8x8xi1>, vector<8x8xf32>
    %cst_24 = arith.constant 0.176776692 : f32
    %23 = vector.broadcast %cst_24 : f32 to vector<8x8xf32>
    %24 = arith.mulf %22, %23 : vector<8x8xf32>
    %cst_25 = arith.constant dense<0xFF800000> : vector<8xf32>
    %25 = vector.multi_reduction <maximumf>, %24, %cst_25 [1] : vector<8x8xf32> to vector<8xf32>
    %26 = vector.shape_cast %25 : vector<8xf32> to vector<8x1xf32>
    %27 = vector.broadcast %26 : vector<8x1xf32> to vector<8x8xf32>
    %28 = arith.subf %24, %27 : vector<8x8xf32>
    %29 = math.exp %28 : vector<8x8xf32>
    %cst_26 = arith.constant dense<0.000000e+00> : vector<8xf32>
    %30 = vector.multi_reduction <add>, %29, %cst_26 [1] : vector<8x8xf32> to vector<8xf32>
    %31 = vector.shape_cast %30 : vector<8xf32> to vector<8x1xf32>
    %32 = tpu.reciprocal %31 : vector<8x1xf32> -> vector<8x1xf32>
    %33 = vector.broadcast %32 : vector<8x1xf32> to vector<8x8xf32>
    %34 = arith.mulf %29, %33 : vector<8x8xf32>
    %cst_27 = arith.constant dense<0.000000e+00> : vector<8x8xf32>
    %35 = tpu.matmul %34, %19, %cst_27 {dimension_numbers = #tpu.dot_dimension_numbers<[1], [0], [0], [1], [0, 0, 1, 1], [], []>} : vector<8x8xf32>, vector<8x8xf32>, vector<8x8xf32> -> vector<8x8xf32>
    %c0_28 = arith.constant 0 : index
    %c0_29 = arith.constant 0 : index
    %36 = vector.load %arg25[%c0_28, %c0_29] : memref<8x32xf32, #tpu.memory_space<vmem>>, vector<8x8xf32>
    tpu.vector_store %arg25[%c0_28, %c0_29], %35 {strides = array<i32>} : memref<8x32xf32, #tpu.memory_space<vmem>>, vector<8x8xf32>,
    %37 = vector.extract_strided_slice %12 {offsets = [0, 8], sizes = [8, 8], strides = [1, 1]} : vector<8x32xf32> to vector<8x8xf32>
    %38 = vector.extract_strided_slice %13 {offsets = [0, 8], sizes = [8, 8], strides = [1, 1]} : vector<8x32xf32> to vector<8x8xf32>
    %39 = vector.extract_strided_slice %14 {offsets = [0, 8], sizes = [8, 8], strides = [1, 1]} : vector<8x32xf32> to vector<8x8xf32>
    %cst_30 = arith.constant dense<0.000000e+00> : vector<8x8xf32>
    %40 = tpu.matmul %37, %38, %cst_30 {dimension_numbers = #tpu.dot_dimension_numbers<[1], [1], [0], [0], [0, 0, 1, 0], [], []>} : vector<8x8xf32>, vector<8x8xf32>, vector<8x8xf32> -> vector<8x8xf32>
    %cst_31 = arith.constant -1.000000e+20 : f32
    %41 = vector.broadcast %cst_31 : f32 to vector<8x8xf32>
    %42 = arith.select %16, %41, %40 : vector<8x8xi1>, vector<8x8xf32>
    %cst_32 = arith.constant 0.176776692 : f32
    %43 = vector.broadcast %cst_32 : f32 to vector<8x8xf32>
    %44 = arith.mulf %42, %43 : vector<8x8xf32>
    %cst_33 = arith.constant dense<0xFF800000> : vector<8xf32>
    %45 = vector.multi_reduction <maximumf>, %44, %cst_33 [1] : vector<8x8xf32> to vector<8xf32>
    %46 = vector.shape_cast %45 : vector<8xf32> to vector<8x1xf32>
    %47 = vector.broadcast %46 : vector<8x1xf32> to vector<8x8xf32>
    %48 = arith.subf %44, %47 : vector<8x8xf32>
    %49 = math.exp %48 : vector<8x8xf32>
    %cst_34 = arith.constant dense<0.000000e+00> : vector<8xf32>
    %50 = vector.multi_reduction <add>, %49, %cst_34 [1] : vector<8x8xf32> to vector<8xf32>
    %51 = vector.shape_cast %50 : vector<8xf32> to vector<8x1xf32>
    %52 = tpu.reciprocal %51 : vector<8x1xf32> -> vector<8x1xf32>
    %53 = vector.broadcast %52 : vector<8x1xf32> to vector<8x8xf32>
    %54 = arith.mulf %49, %53 : vector<8x8xf32>
    %cst_35 = arith.constant dense<0.000000e+00> : vector<8x8xf32>
    %55 = tpu.matmul %54, %39, %cst_35 {dimension_numbers = #tpu.dot_dimension_numbers<[1], [0], [0], [1], [0, 0, 1, 1], [], []>} : vector<8x8xf32>, vector<8x8xf32>, vector<8x8xf32> -> vector<8x8xf32>
    %c0_36 = arith.constant 0 : index
    %c8 = arith.constant 8 : index
    %56 = vector.load %arg25[%c0_36, %c8] : memref<8x32xf32, #tpu.memory_space<vmem>>, vector<8x8xf32>
    tpu.vector_store %arg25[%c0_36, %c8], %55 {strides = array<i32>} : memref<8x32xf32, #tpu.memory_space<vmem>>, vector<8x8xf32>,
    %57 = vector.extract_strided_slice %12 {offsets = [0, 16], sizes = [8, 8], strides = [1, 1]} : vector<8x32xf32> to vector<8x8xf32>
    %58 = vector.extract_strided_slice %13 {offsets = [0, 16], sizes = [8, 8], strides = [1, 1]} : vector<8x32xf32> to vector<8x8xf32>
    %59 = vector.extract_strided_slice %14 {offsets = [0, 16], sizes = [8, 8], strides = [1, 1]} : vector<8x32xf32> to vector<8x8xf32>
    %cst_37 = arith.constant dense<0.000000e+00> : vector<8x8xf32>
    %60 = tpu.matmul %57, %58, %cst_37 {dimension_numbers = #tpu.dot_dimension_numbers<[1], [1], [0], [0], [0, 0, 1, 0], [], []>} : vector<8x8xf32>, vector<8x8xf32>, vector<8x8xf32> -> vector<8x8xf32>
    %cst_38 = arith.constant -1.000000e+20 : f32
    %61 = vector.broadcast %cst_38 : f32 to vector<8x8xf32>
    %62 = arith.select %16, %61, %60 : vector<8x8xi1>, vector<8x8xf32>
    %cst_39 = arith.constant 0.176776692 : f32
    %63 = vector.broadcast %cst_39 : f32 to vector<8x8xf32>
    %64 = arith.mulf %62, %63 : vector<8x8xf32>
    %cst_40 = arith.constant dense<0xFF800000> : vector<8xf32>
    %65 = vector.multi_reduction <maximumf>, %64, %cst_40 [1] : vector<8x8xf32> to vector<8xf32>
    %66 = vector.shape_cast %65 : vector<8xf32> to vector<8x1xf32>
    %67 = vector.broadcast %66 : vector<8x1xf32> to vector<8x8xf32>
    %68 = arith.subf %64, %67 : vector<8x8xf32>
    %69 = math.exp %68 : vector<8x8xf32>
    %cst_41 = arith.constant dense<0.000000e+00> : vector<8xf32>
    %70 = vector.multi_reduction <add>, %69, %cst_41 [1] : vector<8x8xf32> to vector<8xf32>
    %71 = vector.shape_cast %70 : vector<8xf32> to vector<8x1xf32>
    %72 = tpu.reciprocal %71 : vector<8x1xf32> -> vector<8x1xf32>
    %73 = vector.broadcast %72 : vector<8x1xf32> to vector<8x8xf32>
    %74 = arith.mulf %69, %73 : vector<8x8xf32>
    %cst_42 = arith.constant dense<0.000000e+00> : vector<8x8xf32>
    %75 = tpu.matmul %74, %59, %cst_42 {dimension_numbers = #tpu.dot_dimension_numbers<[1], [0], [0], [1], [0, 0, 1, 1], [], []>} : vector<8x8xf32>, vector<8x8xf32>, vector<8x8xf32> -> vector<8x8xf32>
    %c0_43 = arith.constant 0 : index
    %c16 = arith.constant 16 : index
    %76 = vector.load %arg25[%c0_43, %c16] : memref<8x32xf32, #tpu.memory_space<vmem>>, vector<8x8xf32>
    tpu.vector_store %arg25[%c0_43, %c16], %75 {strides = array<i32>} : memref<8x32xf32, #tpu.memory_space<vmem>>, vector<8x8xf32>,
    %77 = vector.extract_strided_slice %12 {offsets = [0, 24], sizes = [8, 8], strides = [1, 1]} : vector<8x32xf32> to vector<8x8xf32>
    %78 = vector.extract_strided_slice %13 {offsets = [0, 24], sizes = [8, 8], strides = [1, 1]} : vector<8x32xf32> to vector<8x8xf32>
    %79 = vector.extract_strided_slice %14 {offsets = [0, 24], sizes = [8, 8], strides = [1, 1]} : vector<8x32xf32> to vector<8x8xf32>
    %cst_44 = arith.constant dense<0.000000e+00> : vector<8x8xf32>
    %80 = tpu.matmul %77, %78, %cst_44 {dimension_numbers = #tpu.dot_dimension_numbers<[1], [1], [0], [0], [0, 0, 1, 0], [], []>} : vector<8x8xf32>, vector<8x8xf32>, vector<8x8xf32> -> vector<8x8xf32>
    %cst_45 = arith.constant -1.000000e+20 : f32
    %81 = vector.broadcast %cst_45 : f32 to vector<8x8xf32>
    %82 = arith.select %16, %81, %80 : vector<8x8xi1>, vector<8x8xf32>
    %cst_46 = arith.constant 0.176776692 : f32
    %83 = vector.broadcast %cst_46 : f32 to vector<8x8xf32>
    %84 = arith.mulf %82, %83 : vector<8x8xf32>
    %cst_47 = arith.constant dense<0xFF800000> : vector<8xf32>
    %85 = vector.multi_reduction <maximumf>, %84, %cst_47 [1] : vector<8x8xf32> to vector<8xf32>
    %86 = vector.shape_cast %85 : vector<8xf32> to vector<8x1xf32>
    %87 = vector.broadcast %86 : vector<8x1xf32> to vector<8x8xf32>
    %88 = arith.subf %84, %87 : vector<8x8xf32>
    %89 = math.exp %88 : vector<8x8xf32>
    %cst_48 = arith.constant dense<0.000000e+00> : vector<8xf32>
    %90 = vector.multi_reduction <add>, %89, %cst_48 [1] : vector<8x8xf32> to vector<8xf32>
    %91 = vector.shape_cast %90 : vector<8xf32> to vector<8x1xf32>
    %92 = tpu.reciprocal %91 : vector<8x1xf32> -> vector<8x1xf32>
    %93 = vector.broadcast %92 : vector<8x1xf32> to vector<8x8xf32>
    %94 = arith.mulf %89, %93 : vector<8x8xf32>
    %cst_49 = arith.constant dense<0.000000e+00> : vector<8x8xf32>
    %95 = tpu.matmul %94, %79, %cst_49 {dimension_numbers = #tpu.dot_dimension_numbers<[1], [0], [0], [1], [0, 0, 1, 1], [], []>} : vector<8x8xf32>, vector<8x8xf32>, vector<8x8xf32> -> vector<8x8xf32>
    %c0_50 = arith.constant 0 : index
    %c24 = arith.constant 24 : index
    %96 = vector.load %arg25[%c0_50, %c24] : memref<8x32xf32, #tpu.memory_space<vmem>>, vector<8x8xf32>
    tpu.vector_store %arg25[%c0_50, %c24], %95 {strides = array<i32>} : memref<8x32xf32, #tpu.memory_space<vmem>>, vector<8x8xf32>,
    %c0_51 = arith.constant 0 : index
    %c0_52 = arith.constant 0 : index
    %97 = vector.load %arg25[%c0_51, %c0_52] : memref<8x32xf32, #tpu.memory_space<vmem>>, vector<8x32xf32>
    %cst_53 = arith.constant dense<0.000000e+00> : vector<8x32xf32>
    %98 = tpu.matmul %97, %11, %cst_53 {dimension_numbers = #tpu.dot_dimension_numbers<[1], [0], [0], [1], [0, 0, 1, 1], [], []>} : vector<8x32xf32>, vector<32x32xf32>, vector<8x32xf32> -> vector<8x32xf32>
    %c0_54 = arith.constant 0 : index
    %c0_55 = arith.constant 0 : index
    %99 = vector.load %arg10[%c0_54, %c0_55] : memref<1x32xf32, #tpu.memory_space<vmem>>, vector<1x32xf32>
    %c0_56 = arith.constant 0 : index
    %c0_57 = arith.constant 0 : index
    %100 = vector.load %arg11[%c0_56, %c0_57] : memref<1x32xf32, #tpu.memory_space<vmem>>, vector<1x32xf32>
    %101 = arith.addf %98, %1 : vector<8x32xf32>
    %cst_58 = arith.constant dense<0.000000e+00> : vector<8xf32>
    %102 = vector.multi_reduction <add>, %101, %cst_58 [1] : vector<8x32xf32> to vector<8xf32>
    %103 = vector.shape_cast %102 : vector<8xf32> to vector<8x1xf32>
    %cst_59 = arith.constant 3.200000e+01 : f32
    %104 = vector.broadcast %cst_59 : f32 to vector<8x1xf32>
    %105 = arith.divf %103, %104 : vector<8x1xf32>
    %106 = vector.broadcast %105 : vector<8x1xf32> to vector<8x32xf32>
    %107 = arith.subf %101, %106 : vector<8x32xf32>
    %108 = arith.mulf %107, %107 : vector<8x32xf32>
    %cst_60 = arith.constant dense<0.000000e+00> : vector<8xf32>
    %109 = vector.multi_reduction <add>, %108, %cst_60 [1] : vector<8x32xf32> to vector<8xf32>
    %110 = vector.shape_cast %109 : vector<8xf32> to vector<8x1xf32>
    %cst_61 = arith.constant 3.200000e+01 : f32
    %111 = vector.broadcast %cst_61 : f32 to vector<8x1xf32>
    %112 = arith.divf %110, %111 : vector<8x1xf32>
    %113 = vector.broadcast %105 : vector<8x1xf32> to vector<8x32xf32>
    %114 = arith.subf %101, %113 : vector<8x32xf32>
    %cst_62 = arith.constant 9.99999974E-6 : f32
    %115 = vector.broadcast %cst_62 : f32 to vector<8x1xf32>
    %116 = arith.addf %112, %115 : vector<8x1xf32>
    %117 = math.rsqrt %116 : vector<8x1xf32>
    %118 = vector.broadcast %117 : vector<8x1xf32> to vector<8x32xf32>
    %119 = arith.mulf %114, %118 : vector<8x32xf32>
    %120 = vector.broadcast %99 : vector<1x32xf32> to vector<8x32xf32>
    %121 = arith.mulf %119, %120 : vector<8x32xf32>
    %122 = vector.broadcast %100 : vector<1x32xf32> to vector<8x32xf32>
    %123 = arith.addf %121, %122 : vector<8x32xf32>
    %c0_63 = arith.constant 0 : index
    %c0_64 = arith.constant 0 : index
    %c0_65 = arith.constant 0 : index
    %124 = vector.load %arg5[%c0_63, %c0_64, %c0_65] : memref<1x8x8xf32, #tpu.memory_space<vmem>>, vector<1x8x8xf32>
    %125 = vector.shape_cast %124 : vector<1x8x8xf32> to vector<8x8xf32>
    %c0_66 = arith.constant 0 : index
    %c0_67 = arith.constant 0 : index
    %126 = vector.load %arg14[%c0_66, %c0_67] : memref<32x32xf32, #tpu.memory_space<vmem>>, vector<32x32xf32>
    %c0_68 = arith.constant 0 : index
    %c0_69 = arith.constant 0 : index
    %127 = vector.load %arg13[%c0_68, %c0_69] : memref<32x32xf32, #tpu.memory_space<vmem>>, vector<32x32xf32>
    %c0_70 = arith.constant 0 : index
    %c0_71 = arith.constant 0 : index
    %128 = vector.load %arg12[%c0_70, %c0_71] : memref<32x32xf32, #tpu.memory_space<vmem>>, vector<32x32xf32>
    %c0_72 = arith.constant 0 : index
    %c0_73 = arith.constant 0 : index
    %129 = vector.load %arg15[%c0_72, %c0_73] : memref<32x32xf32, #tpu.memory_space<vmem>>, vector<32x32xf32>
    %cst_74 = arith.constant dense<0.000000e+00> : vector<8x32xf32>
    %130 = tpu.matmul %123, %126, %cst_74 {dimension_numbers = #tpu.dot_dimension_numbers<[1], [0], [0], [1], [0, 0, 1, 1], [], []>} : vector<8x32xf32>, vector<32x32xf32>, vector<8x32xf32> -> vector<8x32xf32>
    %cst_75 = arith.constant dense<0.000000e+00> : vector<8x32xf32>
    %131 = tpu.matmul %5, %127, %cst_75 {dimension_numbers = #tpu.dot_dimension_numbers<[1], [0], [0], [1], [0, 0, 1, 1], [], []>} : vector<8x32xf32>, vector<32x32xf32>, vector<8x32xf32> -> vector<8x32xf32>
    %cst_76 = arith.constant dense<0.000000e+00> : vector<8x32xf32>
    %132 = tpu.matmul %3, %128, %cst_76 {dimension_numbers = #tpu.dot_dimension_numbers<[1], [0], [0], [1], [0, 0, 1, 1], [], []>} : vector<8x32xf32>, vector<32x32xf32>, vector<8x32xf32> -> vector<8x32xf32>
    %cst_77 = arith.constant 0.000000e+00 : f32
    %133 = vector.broadcast %cst_77 : f32 to vector<8x8xf32>
    %134 = arith.cmpf oeq, %125, %133 : vector<8x8xf32>
    %135 = vector.extract_strided_slice %130 {offsets = [0, 0], sizes = [8, 8], strides = [1, 1]} : vector<8x32xf32> to vector<8x8xf32>
    %136 = vector.extract_strided_slice %131 {offsets = [0, 0], sizes = [8, 8], strides = [1, 1]} : vector<8x32xf32> to vector<8x8xf32>
    %137 = vector.extract_strided_slice %132 {offsets = [0, 0], sizes = [8, 8], strides = [1, 1]} : vector<8x32xf32> to vector<8x8xf32>
    %cst_78 = arith.constant dense<0.000000e+00> : vector<8x8xf32>
    %138 = tpu.matmul %135, %136, %cst_78 {dimension_numbers = #tpu.dot_dimension_numbers<[1], [1], [0], [0], [0, 0, 1, 0], [], []>} : vector<8x8xf32>, vector<8x8xf32>, vector<8x8xf32> -> vector<8x8xf32>
    %cst_79 = arith.constant -1.000000e+20 : f32
    %139 = vector.broadcast %cst_79 : f32 to vector<8x8xf32>
    %140 = arith.select %134, %139, %138 : vector<8x8xi1>, vector<8x8xf32>
    %cst_80 = arith.constant 0.176776692 : f32
    %141 = vector.broadcast %cst_80 : f32 to vector<8x8xf32>
    %142 = arith.mulf %140, %141 : vector<8x8xf32>
    %cst_81 = arith.constant dense<0xFF800000> : vector<8xf32>
    %143 = vector.multi_reduction <maximumf>, %142, %cst_81 [1] : vector<8x8xf32> to vector<8xf32>
    %144 = vector.shape_cast %143 : vector<8xf32> to vector<8x1xf32>
    %145 = vector.broadcast %144 : vector<8x1xf32> to vector<8x8xf32>
    %146 = arith.subf %142, %145 : vector<8x8xf32>
    %147 = math.exp %146 : vector<8x8xf32>
    %cst_82 = arith.constant dense<0.000000e+00> : vector<8xf32>
    %148 = vector.multi_reduction <add>, %147, %cst_82 [1] : vector<8x8xf32> to vector<8xf32>
    %149 = vector.shape_cast %148 : vector<8xf32> to vector<8x1xf32>
    %150 = tpu.reciprocal %149 : vector<8x1xf32> -> vector<8x1xf32>
    %151 = vector.broadcast %150 : vector<8x1xf32> to vector<8x8xf32>
    %152 = arith.mulf %147, %151 : vector<8x8xf32>
    %cst_83 = arith.constant dense<0.000000e+00> : vector<8x8xf32>
    %153 = tpu.matmul %152, %137, %cst_83 {dimension_numbers = #tpu.dot_dimension_numbers<[1], [0], [0], [1], [0, 0, 1, 1], [], []>} : vector<8x8xf32>, vector<8x8xf32>, vector<8x8xf32> -> vector<8x8xf32>
    %c0_84 = arith.constant 0 : index
    %c0_85 = arith.constant 0 : index
    %154 = vector.load %arg25[%c0_84, %c0_85] : memref<8x32xf32, #tpu.memory_space<vmem>>, vector<8x8xf32>
    tpu.vector_store %arg25[%c0_84, %c0_85], %153 {strides = array<i32>} : memref<8x32xf32, #tpu.memory_space<vmem>>, vector<8x8xf32>,
    %155 = vector.extract_strided_slice %130 {offsets = [0, 8], sizes = [8, 8], strides = [1, 1]} : vector<8x32xf32> to vector<8x8xf32>
    %156 = vector.extract_strided_slice %131 {offsets = [0, 8], sizes = [8, 8], strides = [1, 1]} : vector<8x32xf32> to vector<8x8xf32>
    %157 = vector.extract_strided_slice %132 {offsets = [0, 8], sizes = [8, 8], strides = [1, 1]} : vector<8x32xf32> to vector<8x8xf32>
    %cst_86 = arith.constant dense<0.000000e+00> : vector<8x8xf32>
    %158 = tpu.matmul %155, %156, %cst_86 {dimension_numbers = #tpu.dot_dimension_numbers<[1], [1], [0], [0], [0, 0, 1, 0], [], []>} : vector<8x8xf32>, vector<8x8xf32>, vector<8x8xf32> -> vector<8x8xf32>
    %cst_87 = arith.constant -1.000000e+20 : f32
    %159 = vector.broadcast %cst_87 : f32 to vector<8x8xf32>
    %160 = arith.select %134, %159, %158 : vector<8x8xi1>, vector<8x8xf32>
    %cst_88 = arith.constant 0.176776692 : f32
    %161 = vector.broadcast %cst_88 : f32 to vector<8x8xf32>
    %162 = arith.mulf %160, %161 : vector<8x8xf32>
    %cst_89 = arith.constant dense<0xFF800000> : vector<8xf32>
    %163 = vector.multi_reduction <maximumf>, %162, %cst_89 [1] : vector<8x8xf32> to vector<8xf32>
    %164 = vector.shape_cast %163 : vector<8xf32> to vector<8x1xf32>
    %165 = vector.broadcast %164 : vector<8x1xf32> to vector<8x8xf32>
    %166 = arith.subf %162, %165 : vector<8x8xf32>
    %167 = math.exp %166 : vector<8x8xf32>
    %cst_90 = arith.constant dense<0.000000e+00> : vector<8xf32>
    %168 = vector.multi_reduction <add>, %167, %cst_90 [1] : vector<8x8xf32> to vector<8xf32>
    %169 = vector.shape_cast %168 : vector<8xf32> to vector<8x1xf32>
    %170 = tpu.reciprocal %169 : vector<8x1xf32> -> vector<8x1xf32>
    %171 = vector.broadcast %170 : vector<8x1xf32> to vector<8x8xf32>
    %172 = arith.mulf %167, %171 : vector<8x8xf32>
    %cst_91 = arith.constant dense<0.000000e+00> : vector<8x8xf32>
    %173 = tpu.matmul %172, %157, %cst_91 {dimension_numbers = #tpu.dot_dimension_numbers<[1], [0], [0], [1], [0, 0, 1, 1], [], []>} : vector<8x8xf32>, vector<8x8xf32>, vector<8x8xf32> -> vector<8x8xf32>
    %c0_92 = arith.constant 0 : index
    %c8_93 = arith.constant 8 : index
    %174 = vector.load %arg25[%c0_92, %c8_93] : memref<8x32xf32, #tpu.memory_space<vmem>>, vector<8x8xf32>
    tpu.vector_store %arg25[%c0_92, %c8_93], %173 {strides = array<i32>} : memref<8x32xf32, #tpu.memory_space<vmem>>, vector<8x8xf32>,
    %175 = vector.extract_strided_slice %130 {offsets = [0, 16], sizes = [8, 8], strides = [1, 1]} : vector<8x32xf32> to vector<8x8xf32>
    %176 = vector.extract_strided_slice %131 {offsets = [0, 16], sizes = [8, 8], strides = [1, 1]} : vector<8x32xf32> to vector<8x8xf32>
    %177 = vector.extract_strided_slice %132 {offsets = [0, 16], sizes = [8, 8], strides = [1, 1]} : vector<8x32xf32> to vector<8x8xf32>
    %cst_94 = arith.constant dense<0.000000e+00> : vector<8x8xf32>
    %178 = tpu.matmul %175, %176, %cst_94 {dimension_numbers = #tpu.dot_dimension_numbers<[1], [1], [0], [0], [0, 0, 1, 0], [], []>} : vector<8x8xf32>, vector<8x8xf32>, vector<8x8xf32> -> vector<8x8xf32>
    %cst_95 = arith.constant -1.000000e+20 : f32
    %179 = vector.broadcast %cst_95 : f32 to vector<8x8xf32>
    %180 = arith.select %134, %179, %178 : vector<8x8xi1>, vector<8x8xf32>
    %cst_96 = arith.constant 0.176776692 : f32
    %181 = vector.broadcast %cst_96 : f32 to vector<8x8xf32>
    %182 = arith.mulf %180, %181 : vector<8x8xf32>
    %cst_97 = arith.constant dense<0xFF800000> : vector<8xf32>
    %183 = vector.multi_reduction <maximumf>, %182, %cst_97 [1] : vector<8x8xf32> to vector<8xf32>
    %184 = vector.shape_cast %183 : vector<8xf32> to vector<8x1xf32>
    %185 = vector.broadcast %184 : vector<8x1xf32> to vector<8x8xf32>
    %186 = arith.subf %182, %185 : vector<8x8xf32>
    %187 = math.exp %186 : vector<8x8xf32>
    %cst_98 = arith.constant dense<0.000000e+00> : vector<8xf32>
    %188 = vector.multi_reduction <add>, %187, %cst_98 [1] : vector<8x8xf32> to vector<8xf32>
    %189 = vector.shape_cast %188 : vector<8xf32> to vector<8x1xf32>
    %190 = tpu.reciprocal %189 : vector<8x1xf32> -> vector<8x1xf32>
    %191 = vector.broadcast %190 : vector<8x1xf32> to vector<8x8xf32>
    %192 = arith.mulf %187, %191 : vector<8x8xf32>
    %cst_99 = arith.constant dense<0.000000e+00> : vector<8x8xf32>
    %193 = tpu.matmul %192, %177, %cst_99 {dimension_numbers = #tpu.dot_dimension_numbers<[1], [0], [0], [1], [0, 0, 1, 1], [], []>} : vector<8x8xf32>, vector<8x8xf32>, vector<8x8xf32> -> vector<8x8xf32>
    %c0_100 = arith.constant 0 : index
    %c16_101 = arith.constant 16 : index
    %194 = vector.load %arg25[%c0_100, %c16_101] : memref<8x32xf32, #tpu.memory_space<vmem>>, vector<8x8xf32>
    tpu.vector_store %arg25[%c0_100, %c16_101], %193 {strides = array<i32>} : memref<8x32xf32, #tpu.memory_space<vmem>>, vector<8x8xf32>,
    %195 = vector.extract_strided_slice %130 {offsets = [0, 24], sizes = [8, 8], strides = [1, 1]} : vector<8x32xf32> to vector<8x8xf32>
    %196 = vector.extract_strided_slice %131 {offsets = [0, 24], sizes = [8, 8], strides = [1, 1]} : vector<8x32xf32> to vector<8x8xf32>
    %197 = vector.extract_strided_slice %132 {offsets = [0, 24], sizes = [8, 8], strides = [1, 1]} : vector<8x32xf32> to vector<8x8xf32>
    %cst_102 = arith.constant dense<0.000000e+00> : vector<8x8xf32>
    %198 = tpu.matmul %195, %196, %cst_102 {dimension_numbers = #tpu.dot_dimension_numbers<[1], [1], [0], [0], [0, 0, 1, 0], [], []>} : vector<8x8xf32>, vector<8x8xf32>, vector<8x8xf32> -> vector<8x8xf32>
    %cst_103 = arith.constant -1.000000e+20 : f32
    %199 = vector.broadcast %cst_103 : f32 to vector<8x8xf32>
    %200 = arith.select %134, %199, %198 : vector<8x8xi1>, vector<8x8xf32>
    %cst_104 = arith.constant 0.176776692 : f32
    %201 = vector.broadcast %cst_104 : f32 to vector<8x8xf32>
    %202 = arith.mulf %200, %201 : vector<8x8xf32>
    %cst_105 = arith.constant dense<0xFF800000> : vector<8xf32>
    %203 = vector.multi_reduction <maximumf>, %202, %cst_105 [1] : vector<8x8xf32> to vector<8xf32>
    %204 = vector.shape_cast %203 : vector<8xf32> to vector<8x1xf32>
    %205 = vector.broadcast %204 : vector<8x1xf32> to vector<8x8xf32>
    %206 = arith.subf %202, %205 : vector<8x8xf32>
    %207 = math.exp %206 : vector<8x8xf32>
    %cst_106 = arith.constant dense<0.000000e+00> : vector<8xf32>
    %208 = vector.multi_reduction <add>, %207, %cst_106 [1] : vector<8x8xf32> to vector<8xf32>
    %209 = vector.shape_cast %208 : vector<8xf32> to vector<8x1xf32>
    %210 = tpu.reciprocal %209 : vector<8x1xf32> -> vector<8x1xf32>
    %211 = vector.broadcast %210 : vector<8x1xf32> to vector<8x8xf32>
    %212 = arith.mulf %207, %211 : vector<8x8xf32>
    %cst_107 = arith.constant dense<0.000000e+00> : vector<8x8xf32>
    %213 = tpu.matmul %212, %197, %cst_107 {dimension_numbers = #tpu.dot_dimension_numbers<[1], [0], [0], [1], [0, 0, 1, 1], [], []>} : vector<8x8xf32>, vector<8x8xf32>, vector<8x8xf32> -> vector<8x8xf32>
    %c0_108 = arith.constant 0 : index
    %c24_109 = arith.constant 24 : index
    %214 = vector.load %arg25[%c0_108, %c24_109] : memref<8x32xf32, #tpu.memory_space<vmem>>, vector<8x8xf32>
    tpu.vector_store %arg25[%c0_108, %c24_109], %213 {strides = array<i32>} : memref<8x32xf32, #tpu.memory_space<vmem>>, vector<8x8xf32>,
    %c0_110 = arith.constant 0 : index
    %c0_111 = arith.constant 0 : index
    %215 = vector.load %arg25[%c0_110, %c0_111] : memref<8x32xf32, #tpu.memory_space<vmem>>, vector<8x32xf32>
    %cst_112 = arith.constant dense<0.000000e+00> : vector<8x32xf32>
    %216 = tpu.matmul %215, %129, %cst_112 {dimension_numbers = #tpu.dot_dimension_numbers<[1], [0], [0], [1], [0, 0, 1, 1], [], []>} : vector<8x32xf32>, vector<32x32xf32>, vector<8x32xf32> -> vector<8x32xf32>
    %c0_113 = arith.constant 0 : index
    %c0_114 = arith.constant 0 : index
    %217 = vector.load %arg16[%c0_113, %c0_114] : memref<1x32xf32, #tpu.memory_space<vmem>>, vector<1x32xf32>
    %c0_115 = arith.constant 0 : index
    %c0_116 = arith.constant 0 : index
    %218 = vector.load %arg17[%c0_115, %c0_116] : memref<1x32xf32, #tpu.memory_space<vmem>>, vector<1x32xf32>
    %219 = arith.addf %216, %123 : vector<8x32xf32>
    %cst_117 = arith.constant dense<0.000000e+00> : vector<8xf32>
    %220 = vector.multi_reduction <add>, %219, %cst_117 [1] : vector<8x32xf32> to vector<8xf32>
    %221 = vector.shape_cast %220 : vector<8xf32> to vector<8x1xf32>
    %cst_118 = arith.constant 3.200000e+01 : f32
    %222 = vector.broadcast %cst_118 : f32 to vector<8x1xf32>
    %223 = arith.divf %221, %222 : vector<8x1xf32>
    %224 = vector.broadcast %223 : vector<8x1xf32> to vector<8x32xf32>
    %225 = arith.subf %219, %224 : vector<8x32xf32>
    %226 = arith.mulf %225, %225 : vector<8x32xf32>
    %cst_119 = arith.constant dense<0.000000e+00> : vector<8xf32>
    %227 = vector.multi_reduction <add>, %226, %cst_119 [1] : vector<8x32xf32> to vector<8xf32>
    %228 = vector.shape_cast %227 : vector<8xf32> to vector<8x1xf32>
    %cst_120 = arith.constant 3.200000e+01 : f32
    %229 = vector.broadcast %cst_120 : f32 to vector<8x1xf32>
    %230 = arith.divf %228, %229 : vector<8x1xf32>
    %231 = vector.broadcast %223 : vector<8x1xf32> to vector<8x32xf32>
    %232 = arith.subf %219, %231 : vector<8x32xf32>
    %cst_121 = arith.constant 9.99999974E-6 : f32
    %233 = vector.broadcast %cst_121 : f32 to vector<8x1xf32>
    %234 = arith.addf %230, %233 : vector<8x1xf32>
    %235 = math.rsqrt %234 : vector<8x1xf32>
    %236 = vector.broadcast %235 : vector<8x1xf32> to vector<8x32xf32>
    %237 = arith.mulf %232, %236 : vector<8x32xf32>
    %238 = vector.broadcast %217 : vector<1x32xf32> to vector<8x32xf32>
    %239 = arith.mulf %237, %238 : vector<8x32xf32>
    %240 = vector.broadcast %218 : vector<1x32xf32> to vector<8x32xf32>
    %241 = arith.addf %239, %240 : vector<8x32xf32>
    %c0_122 = arith.constant 0 : index
    %c0_123 = arith.constant 0 : index
    %242 = vector.load %arg18[%c0_122, %c0_123] : memref<32x128xf32, #tpu.memory_space<vmem>>, vector<32x128xf32>
    %cst_124 = arith.constant dense<0.000000e+00> : vector<8x128xf32>
    %243 = tpu.matmul %241, %242, %cst_124 {dimension_numbers = #tpu.dot_dimension_numbers<[1], [0], [0], [1], [0, 0, 1, 1], [], []>} : vector<8x32xf32>, vector<32x128xf32>, vector<8x128xf32> -> vector<8x128xf32>
    %c0_125 = arith.constant 0 : index
    %c0_126 = arith.constant 0 : index
    %244 = vector.load %arg19[%c0_125, %c0_126] : memref<1x128xf32, #tpu.memory_space<vmem>>, vector<1x128xf32>
    %245 = vector.broadcast %244 : vector<1x128xf32> to vector<8x128xf32>
    %246 = arith.addf %243, %245 : vector<8x128xf32>
    %cst_127 = arith.constant 0.000000e+00 : f32
    %247 = vector.broadcast %cst_127 : f32 to vector<8x128xf32>
    %248 = arith.maximumf %246, %247 : vector<8x128xf32>
    %c0_128 = arith.constant 0 : index
    %c0_129 = arith.constant 0 : index
    %249 = vector.load %arg20[%c0_128, %c0_129] : memref<128x32xf32, #tpu.memory_space<vmem>>, vector<128x32xf32>
    %cst_130 = arith.constant dense<0.000000e+00> : vector<8x32xf32>
    %250 = tpu.matmul %248, %249, %cst_130 {dimension_numbers = #tpu.dot_dimension_numbers<[1], [0], [0], [1], [0, 0, 1, 1], [], []>} : vector<8x128xf32>, vector<128x32xf32>, vector<8x32xf32> -> vector<8x32xf32>
    %c0_131 = arith.constant 0 : index
    %c0_132 = arith.constant 0 : index
    %251 = vector.load %arg21[%c0_131, %c0_132] : memref<1x32xf32, #tpu.memory_space<vmem>>, vector<1x32xf32>
    %252 = vector.broadcast %251 : vector<1x32xf32> to vector<8x32xf32>
    %253 = arith.addf %250, %252 : vector<8x32xf32>
    %c0_133 = arith.constant 0 : index
    %c0_134 = arith.constant 0 : index
    %254 = vector.load %arg22[%c0_133, %c0_134] : memref<1x32xf32, #tpu.memory_space<vmem>>, vector<1x32xf32>
    %c0_135 = arith.constant 0 : index
    %c0_136 = arith.constant 0 : index
    %255 = vector.load %arg23[%c0_135, %c0_136] : memref<1x32xf32, #tpu.memory_space<vmem>>, vector<1x32xf32>
    %256 = arith.addf %253, %241 : vector<8x32xf32>
    %cst_137 = arith.constant dense<0.000000e+00> : vector<8xf32>
    %257 = vector.multi_reduction <add>, %256, %cst_137 [1] : vector<8x32xf32> to vector<8xf32>
    %258 = vector.shape_cast %257 : vector<8xf32> to vector<8x1xf32>
    %cst_138 = arith.constant 3.200000e+01 : f32
    %259 = vector.broadcast %cst_138 : f32 to vector<8x1xf32>
    %260 = arith.divf %258, %259 : vector<8x1xf32>
    %261 = vector.broadcast %260 : vector<8x1xf32> to vector<8x32xf32>
    %262 = arith.subf %256, %261 : vector<8x32xf32>
    %263 = arith.mulf %262, %262 : vector<8x32xf32>
    %cst_139 = arith.constant dense<0.000000e+00> : vector<8xf32>
    %264 = vector.multi_reduction <add>, %263, %cst_139 [1] : vector<8x32xf32> to vector<8xf32>
    %265 = vector.shape_cast %264 : vector<8xf32> to vector<8x1xf32>
    %cst_140 = arith.constant 3.200000e+01 : f32
    %266 = vector.broadcast %cst_140 : f32 to vector<8x1xf32>
    %267 = arith.divf %265, %266 : vector<8x1xf32>
    %268 = vector.broadcast %260 : vector<8x1xf32> to vector<8x32xf32>
    %269 = arith.subf %256, %268 : vector<8x32xf32>
    %cst_141 = arith.constant 9.99999974E-6 : f32
    %270 = vector.broadcast %cst_141 : f32 to vector<8x1xf32>
    %271 = arith.addf %267, %270 : vector<8x1xf32>
    %272 = math.rsqrt %271 : vector<8x1xf32>
    %273 = vector.broadcast %272 : vector<8x1xf32> to vector<8x32xf32>
    %274 = arith.mulf %269, %273 : vector<8x32xf32>
    %275 = vector.broadcast %254 : vector<1x32xf32> to vector<8x32xf32>
    %276 = arith.mulf %274, %275 : vector<8x32xf32>
    %277 = vector.broadcast %255 : vector<1x32xf32> to vector<8x32xf32>
    %278 = arith.addf %276, %277 : vector<8x32xf32>
    %c0_142 = arith.constant 0 : index
    %c0_143 = arith.constant 0 : index
    %c0_144 = arith.constant 0 : index
    %279 = vector.load %arg24[%c0_142, %c0_143, %c0_144] : memref<1x8x32xf32, #tpu.memory_space<vmem>>, vector<1x8x32xf32>
    %280 = vector.shape_cast %279 : vector<1x8x32xf32> to vector<8x32xf32>
    %281 = vector.shape_cast %278 : vector<8x32xf32> to vector<1x8x32xf32>
    tpu.vector_store %arg24[%c0_142, %c0_143, %c0_144], %281 {strides = array<i32>} : memref<1x8x32xf32, #tpu.memory_space<vmem>>, vector<1x8x32xf32>,
    return
  }
  func.func @transform_0(%arg0: i32) -> (i32, i32, i32) {
    %c0_i32 = arith.constant 0 : i32
    %c0_i32_0 = arith.constant 0 : i32
    %c0_i32_1 = arith.constant 0 : i32
    return %arg0, %c0_i32, %c0_i32_0 : i32, i32, i32
  }
  func.func @transform_1(%arg0: i32) -> (i32, i32, i32) {
    %c0_i32 = arith.constant 0 : i32
    %c0_i32_0 = arith.constant 0 : i32
    %c0_i32_1 = arith.constant 0 : i32
    return %arg0, %c0_i32, %c0_i32_0 : i32, i32, i32
  }
  func.func @transform_2(%arg0: i32) -> (i32, i32, i32) {
    %c0_i32 = arith.constant 0 : i32
    %c0_i32_0 = arith.constant 0 : i32
    %c0_i32_1 = arith.constant 0 : i32
    return %arg0, %c0_i32, %c0_i32_0 : i32, i32, i32
  }
  func.func @transform_3(%arg0: i32) -> (i32, i32, i32) {
    %c0_i32 = arith.constant 0 : i32
    %c0_i32_0 = arith.constant 0 : i32
    %c0_i32_1 = arith.constant 0 : i32
    return %arg0, %c0_i32, %c0_i32_0 : i32, i32, i32
  }
  func.func @transform_4(%arg0: i32) -> (i32, i32, i32) {
    %c0_i32 = arith.constant 0 : i32
    %c0_i32_0 = arith.constant 0 : i32
    %c0_i32_1 = arith.constant 0 : i32
    return %arg0, %c0_i32, %c0_i32_0 : i32, i32, i32
  }
  func.func @transform_5(%arg0: i32) -> (i32, i32) {
    %c0_i32 = arith.constant 0 : i32
    %c0_i32_0 = arith.constant 0 : i32
    %c0_i32_1 = arith.constant 0 : i32
    return %c0_i32, %c0_i32_0 : i32, i32
  }
  func.func @transform_6(%arg0: i32) -> (i32, i32) {
    %c0_i32 = arith.constant 0 : i32
    %c0_i32_0 = arith.constant 0 : i32
    %c0_i32_1 = arith.constant 0 : i32
    return %c0_i32, %c0_i32_0 : i32, i32
  }
  func.func @transform_7(%arg0: i32) -> (i32, i32) {
    %c0_i32 = arith.constant 0 : i32
    %c0_i32_0 = arith.constant 0 : i32
    %c0_i32_1 = arith.constant 0 : i32
    return %c0_i32, %c0_i32_0 : i32, i32
  }
  func.func @transform_8(%arg0: i32) -> (i32, i32) {
    %c0_i32 = arith.constant 0 : i32
    %c0_i32_0 = arith.constant 0 : i32
    %c0_i32_1 = arith.constant 0 : i32
    return %c0_i32, %c0_i32_0 : i32, i32
  }
  func.func @transform_9(%arg0: i32) -> (i32, i32) {
    %c0_i32 = arith.constant 0 : i32
    %c0_i32_0 = arith.constant 0 : i32
    %c0_i32_1 = arith.constant 0 : i32
    return %c0_i32, %c0_i32_0 : i32, i32
  }
  func.func @transform_10(%arg0: i32) -> (i32, i32) {
    %c0_i32 = arith.constant 0 : i32
    %c0_i32_0 = arith.constant 0 : i32
    %c0_i32_1 = arith.constant 0 : i32
    return %c0_i32, %c0_i32_0 : i32, i32
  }
  func.func @transform_11(%arg0: i32) -> (i32, i32) {
    %c0_i32 = arith.constant 0 : i32
    %c0_i32_0 = arith.constant 0 : i32
    %c0_i32_1 = arith.constant 0 : i32
    return %c0_i32, %c0_i32_0 : i32, i32
  }
  func.func @transform_12(%arg0: i32) -> (i32, i32) {
    %c0_i32 = arith.constant 0 : i32
    %c0_i32_0 = arith.constant 0 : i32
    %c0_i32_1 = arith.constant 0 : i32
    return %c0_i32, %c0_i32_0 : i32, i32
  }
  func.func @transform_13(%arg0: i32) -> (i32, i32) {
    %c0_i32 = arith.constant 0 : i32
    %c0_i32_0 = arith.constant 0 : i32
    %c0_i32_1 = arith.constant 0 : i32
    return %c0_i32, %c0_i32_0 : i32, i32
  }
  func.func @transform_14(%arg0: i32) -> (i32, i32) {
    %c0_i32 = arith.constant 0 : i32
    %c0_i32_0 = arith.constant 0 : i32
    %c0_i32_1 = arith.constant 0 : i32
    return %c0_i32, %c0_i32_0 : i32, i32
  }
  func.func @transform_15(%arg0: i32) -> (i32, i32) {
    %c0_i32 = arith.constant 0 : i32
    %c0_i32_0 = arith.constant 0 : i32
    %c0_i32_1 = arith.constant 0 : i32
    return %c0_i32, %c0_i32_0 : i32, i32
  }
  func.func @transform_16(%arg0: i32) -> (i32, i32) {
    %c0_i32 = arith.constant 0 : i32
    %c0_i32_0 = arith.constant 0 : i32
    %c0_i32_1 = arith.constant 0 : i32
    return %c0_i32, %c0_i32_0 : i32, i32
  }
  func.func @transform_17(%arg0: i32) -> (i32, i32) {
    %c0_i32 = arith.constant 0 : i32
    %c0_i32_0 = arith.constant 0 : i32
    %c0_i32_1 = arith.constant 0 : i32
    return %c0_i32, %c0_i32_0 : i32, i32
  }
  func.func @transform_18(%arg0: i32) -> (i32, i32) {
    %c0_i32 = arith.constant 0 : i32
    %c0_i32_0 = arith.constant 0 : i32
    %c0_i32_1 = arith.constant 0 : i32
    return %c0_i32, %c0_i32_0 : i32, i32
  }
  func.func @transform_19(%arg0: i32) -> (i32, i32) {
    %c0_i32 = arith.constant 0 : i32
    %c0_i32_0 = arith.constant 0 : i32
    %c0_i32_1 = arith.constant 0 : i32
    return %c0_i32, %c0_i32_0 : i32, i32
  }
  func.func @transform_20(%arg0: i32) -> (i32, i32) {
    %c0_i32 = arith.constant 0 : i32
    %c0_i32_0 = arith.constant 0 : i32
    %c0_i32_1 = arith.constant 0 : i32
    return %c0_i32, %c0_i32_0 : i32, i32
  }
  func.func @transform_21(%arg0: i32) -> (i32, i32) {
    %c0_i32 = arith.constant 0 : i32
    %c0_i32_0 = arith.constant 0 : i32
    %c0_i32_1 = arith.constant 0 : i32
    return %c0_i32, %c0_i32_0 : i32, i32
  }
  func.func @transform_22(%arg0: i32) -> (i32, i32) {
    %c0_i32 = arith.constant 0 : i32
    %c0_i32_0 = arith.constant 0 : i32
    %c0_i32_1 = arith.constant 0 : i32
    return %c0_i32, %c0_i32_0 : i32, i32
  }
  func.func @transform_23(%arg0: i32) -> (i32, i32, i32) {
    %c0_i32 = arith.constant 0 : i32
    %c0_i32_0 = arith.constant 0 : i32
    %c0_i32_1 = arith.constant 0 : i32
    return %arg0, %c0_i32, %c0_i32_0 : i32, i32, i32
  }
}

</mosaic_0001>

<bundles_post_ra>
// kernel: tpu_custom_call.1
= control target key start
LH: loop header
LB: loop body
LE: loop exit
PB: predicated region body
PF: predicated region fallthrough
CT: control target
= control target key end

     0   :  { %s5526_s0 = inlined_call_operand.hbm [shape: f32[2,8,32], index: 0, kind: input, shape index: {}]   ;;  %s5527_s1 = inlined_call_operand.hbm [shape: f32[2,8,32], index: 1, kind: input, shape index: {}]   ;;  %s5528_s2 = inlined_call_operand.hbm [shape: f32[2,8,32], index: 2, kind: input, shape index: {}]   ;;  %s5529_s3 = inlined_call_operand.hbm [shape: f32[2,8,8], index: 3, kind: input, shape index: {}]   ;;  %s5530_s4 = inlined_call_operand.hbm [shape: f32[2,8,8], index: 4, kind: input, shape index: {}]   ;;  %s5531_s5 = inlined_call_operand.vmem [shape: f32[32,32], index: 5, kind: input, shape index: {}]   ;;  %s5532_s6 = inlined_call_operand.vmem [shape: f32[32,32], index: 6, kind: input, shape index: {}]   ;;  %s5533_s7 = inlined_call_operand.vmem [shape: f32[32,32], index: 7, kind: input, shape index: {}]   ;;  %s5534_s8 = inlined_call_operand.vmem [shape: f32[32,32], index: 8, kind: input, shape index: {}]   ;;  %s5535_s9 = inlined_call_operand.hbm [shape: f32[1,32], index: 9, kind: input, shape index: {}]   ;;  %s5536_s10 = inlined_call_operand.hbm [shape: f32[1,32], index: 10, kind: input, shape index: {}]   ;;  %s5537_s11 = inlined_call_operand.vmem [shape: f32[32,32], index: 11, kind: input, shape index: {}]   ;;  %s5538_s12 = inlined_call_operand.vmem [shape: f32[32,32], index: 12, kind: input, shape index: {}]   ;;  %s5539_s13 = inlined_call_operand.hbm [shape: f32[32,32], index: 13, kind: input, shape index: {}]   ;;  %s5540_s14 = inlined_call_operand.hbm [shape: f32[32,32], index: 14, kind: input, shape index: {}]   ;;  %s5541_s15 = inlined_call_operand.hbm [shape: f32[1,32], index: 15, kind: input, shape index: {}]   ;;  %s5542_s16 = inlined_call_operand.hbm [shape: f32[1,32], index: 16, kind: input, shape index: {}]   ;;  %s5543_s17 = inlined_call_operand.hbm [shape: f32[32,128], index: 17, kind: input, shape index: {}]   ;;  %s5544_s18 = inlined_call_operand.vmem [shape: f32[1,128], index: 18, kind: input, shape index: {}]   ;;  %s5545_s19 = inlined_call_operand.vmem [shape: f32[128,32], index: 19, kind: input, shape index: {}]   ;;  %s5546_s20 = inlined_call_operand.vmem [shape: f32[1,32], index: 20, kind: input, shape index: {}]   ;;  %s5547_s21 = inlined_call_operand.vmem [shape: f32[1,32], index: 21, kind: input, shape index: {}]   ;;  %s5548_s22 = inlined_call_operand.vmem [shape: f32[1,32], index: 22, kind: input, shape index: {}]   ;;  %s5549_s23 = inlined_call_operand.hbm [shape: f32[2,8,32], index: 23, kind: output, shape index: {}]  }
   0x1   :  { %5594 = sst [smem:[#allocation37_spill]] %s5526_s0 }
   0x2   :  { %5595 = sst [smem:[#allocation38_spill]] %s5527_s1 }
   0x3   :  { %5596 = sst [smem:[#allocation39_spill]] %s5528_s2 }
   0x4   :  { %5597 = sst [smem:[#allocation40_spill]] %s5529_s3 }
   0x5   :  { %5598 = sst [smem:[#allocation41_spill]] %s5530_s4 }
   0x6   :  { %5599 = sst [smem:[#allocation42_spill]] %s5531_s5 }
   0x7   :  { %5600 = sst [smem:[#allocation43_spill]] %s5532_s6 }
   0x8   :  { %5601 = sst [smem:[#allocation44_spill]] %s5533_s7 }
   0x9   :  { %5602 = sst [smem:[#allocation45_spill]] %s5534_s8 }
   0xa   :  { %5603 = sst [smem:[#allocation46_spill]] %s5535_s9 }
   0xb   :  { %5604 = sst [smem:[#allocation47_spill]] %s5536_s10 }
   0xc   :  { %5605 = sst [smem:[#allocation48_spill]] %s5537_s11 }
   0xd   :  { %5606 = sst [smem:[#allocation49_spill]] %s5538_s12 }
   0xe   :  { %5607 = sst [smem:[#allocation50_spill]] %s5539_s13 }
   0xf   :  { %5608 = sst [smem:[#allocation51_spill]] %s5541_s15 }
  0x10   :  { %5609 = sst [smem:[#allocation52_spill]] %s5544_s18 }
  0x11   :  { %5610 = sst [smem:[#allocation53_spill]] %s5545_s19 }
  0x12   :  { %5611 = sst [smem:[#allocation54_spill]] %s5546_s20 }
  0x13   :  { %5612 = sst [smem:[#allocation55_spill]] %s5547_s21 }
  0x14   :  { %5613 = sst [smem:[#allocation56_spill]] %s5548_s22 }
  0x15   :  { %5614 = sst [smem:[#allocation57_spill]] %s5549_s23 }
  0x16   :  { %28 = vsyncpa [#allocation4], 0 }
  0x17   :  { %30 = vsyncpa [#allocation4 + $0x1], 0 }
  0x18   :  { %31 = vsyncpa [#allocation7], 0 }
  0x19   :  { %33 = vsyncpa [#allocation7 + $0x1], 0 }
  0x1a   :  { %34 = vsyncpa [#allocation10], 0 }
  0x1b   :  { %36 = vsyncpa [#allocation10 + $0x1], 0 }
  0x1c   :  { %37 = vsyncpa [#allocation13], 0 }
  0x1d   :  { %38 = vsyncpa [#allocation16], 0 }
  0x1e   :  { %39 = vsyncpa [#allocation19], 0 }
  0x1f   :  { %40 = vsyncpa [#allocation22], 0 }
  0x20   :  { %41 = vsyncpa [#allocation5], 0 }
  0x21   :  { %43 = vsyncpa [#allocation5 + $0x1], 0  ;;  %s4684_s4 = smov 0   ;;  %s4686_s30 = smov 0  }
  0x22   :  { %s4688_s24 = smov 0   ;;  %s4690_s25 = smov 0  }
  0x23 LB: > { %5615 = sst [smem:[#allocation32_spill]] %s4526_s4  ;;  %s4540_s5 = smov [#allocation12]   ;;  %s4538_s25 = sphi %s4690_s25, %s5680_s25   ;;  %s4534_s24 = sphi %s4688_s24, %s5684_s24   ;;  %s4530_s30 = sphi %s4686_s30, %s5683_s30   ;;  %s4526_s4 = sphi %s4684_s4, %s5682_s4  }
  0x24   : > { %s613_s1 = sshll.u32 %s4540_s5, 4  ;;  %s4705_s26 = sadd.s32 4294967295, %s4538_s25   ;;  %s4710_s1 = int_to_ptr.vmem [resolvable:$true] %s613_s1 }
  0x25   : > { %p3452_p0 = scmp.ge.s32.totalorder %s4538_s25, 1  ;;  %p5571_p1 = scmp.eq.s32.totalorder %s4705_s26, 0 }
  0x26   : > { %p588_p2 = scmp.lt.s32.totalorder %s4538_s25, 3  ;;  %s4541_s6 = smov [#allocation15]  }
  0x27   : > { %s640_s27 = sshll.u32 %s4541_s6, 4  ;;  %s4542_s28 = smov [#allocation18]   ;;  %s4719_s27 = int_to_ptr.vmem [resolvable:$true] %s640_s27 }
  0x28   : > { %p4712_p3 = pnand %p3452_p0, %p588_p2  ;;  %s667_s29 = sshll.u32 %s4542_s28, 4  ;;  %s4727_s29 = int_to_ptr.vmem [resolvable:$true] %s667_s29 }
  0x29   : > { %s5618_s9 = sld [smem:[#allocation46_spill]] }
  0x2a   : > { %s5616_s2 = scalar_select %p4712_p3, 1, 0 }
  0x2b   : > { %p3956_p5 = pneg %p4712_p3 }
  0x2d   : > { %p4723_p6 = pnand %p3956_p5, %p5571_p1 }
  0x2f   : > { %s5617_s7 = scalar_select %p4723_p6, 1, 0 }
  0x30   : > { %s4102_s5 = scalar_lea.hbm %s5618_s9, 16  ;;  %p4737_p8 = pneg %p4723_p6 }
  0x31   : > { %p4103_p7 = scmp.ne.s32.totalorder %s5618_s9, %s4102_s5  ;;  %p4109_p11 = scmp.lt.u32.totalorder %s4102_s5, %s5618_s9 }
  0x32   : > { %s5619_s6 = scalar_select %p4737_p8, 1, 0 }
  0x33   : > { %p4105_p9 = pnand %p4737_p8, %p4103_p7 }
  0x35   : > { %p4106_p10 = pneg %p4105_p9 }
  0x37   : > { %p4111_p12 = pnand %p4109_p11, %p4106_p10 }
  0x39   : > { %4114 = shalt.err (!%p4111_p12)
}
  0x3a   : > { %s4115_s22 = scalar_lea.vmem %s4710_s1, 16  ;;  %s4122_s23 = scalar_lea.vmem %s4710_s1, 32 }
  0x3b   : > { %p4116_p13 = scmp.ne.s32.totalorder %s4710_s1, %s4115_s22  ;;  %p4123_p5 = scmp.lt.s32.totalorder %s4710_s1, %s4710_s1 }
  0x3c   : > { %p4124_p7 = scmp.lt.s32.totalorder %s4122_s23, %s4115_s22 }
  0x3d   : > { %p4118_p0 = pnand %p4116_p13, %p4737_p8 }
  0x3e   : > { %p4125_p9 = por %p4124_p7, %p4123_p5 }
  0x3f   : > { %p4119_p2 = pneg %p4118_p0 }
  0x41   : > { %p4126_p4 = pnand %p4125_p9, %p4119_p2 }
  0x43   : > { %4129 = shalt.err (!%p4126_p4)
}
  0x44   : > { %3959 = dma.hbm_to_vmem [thread:$0]  (!%p4723_p6), %s5618_s9, 16, %s4710_s1, [#allocation13]  }
  0x45   : > { %s5620_s13 = sld [smem:[#allocation50_spill]] }
  0x4b   : > { %s4130_s28 = scalar_lea.hbm %s5620_s13, 512 }
  0x4c   : > { %p4131_p10 = scmp.ne.s32.totalorder %s5620_s13, %s4130_s28  ;;  %p4137_p4 = scmp.lt.u32.totalorder %s4130_s28, %s5620_s13 }
  0x4e   : > { %p4133_p11 = pnand %p4131_p10, %p4737_p8 }
  0x50   : > { %p4134_p12 = pneg %p4133_p11 }
  0x52   : > { %p4139_p13 = pnand %p4137_p4, %p4134_p12 }
  0x54   : > { %4142 = shalt.err (!%p4139_p13)
}
  0x55   : > { %s4143_s1 = scalar_lea.vmem %s4719_s27, 512  ;;  %p4151_p7 = scmp.lt.s32.totalorder %s4719_s27, %s4719_s27 }
  0x56   : > { %p4144_p0 = scmp.ne.s32.totalorder %s4719_s27, %s4143_s1  ;;  %p4152_p9 = scmp.lt.s32.totalorder %s4143_s1, %s4143_s1 }
  0x58   : > { %p4146_p2 = pnand %p4144_p0, %p4737_p8  ;;  %p4153_p10 = por %p4152_p9, %p4151_p7 }
  0x5a   : > { %p4147_p5 = pneg %p4146_p2 }
  0x5c   : > { %p4154_p11 = pnand %p4153_p10, %p4147_p5 }
  0x5e   : > { %4157 = shalt.err (!%p4154_p11)
}
  0x5f   : > { %s5560_s18 = smov 128   ;;  %s5562_s20 = smov 8  }
  0x60   : > { %3965 = dma.hbm_to_vmem [thread:$0]  (!%p4723_p6), %s5620_s13, 512, %s4719_s27, [#allocation16], %s5560_s18, %s5560_s18, %s5562_s20  }
  0x61   : > { %s5621_s15 = sld [smem:[#allocation51_spill]] }
  0x67   : > { %s4158_s28 = scalar_lea.hbm %s5621_s15, 16 }
  0x68   : > { %p4159_p12 = scmp.ne.s32.totalorder %s5621_s15, %s4158_s28  ;;  %p4165_p0 = scmp.lt.u32.totalorder %s4158_s28, %s5621_s15 }
  0x6a   : > { %p4161_p4 = pnand %p4159_p12, %p4737_p8 }
  0x6c   : > { %p4162_p13 = pneg %p4161_p4 }
  0x6e   : > { %p4167_p2 = pnand %p4165_p0, %p4162_p13 }
  0x70   : > { %4170 = shalt.err (!%p4167_p2)
}
  0x71   : > { %s4171_s27 = scalar_lea.vmem %s4727_s29, 16  ;;  %s4178_s21 = scalar_lea.vmem %s4727_s29, 32 }
  0x72   : > { %p4172_p5 = scmp.ne.s32.totalorder %s4727_s29, %s4171_s27  ;;  %p4179_p10 = scmp.lt.s32.totalorder %s4727_s29, %s4727_s29 }
  0x73   : > { %p4180_p11 = scmp.lt.s32.totalorder %s4178_s21, %s4171_s27 }
  0x74   : > { %p4174_p7 = pnand %p4172_p5, %p4737_p8 }
  0x75   : > { %p4181_p12 = por %p4180_p11, %p4179_p10 }
  0x76   : > { %p4175_p9 = pneg %p4174_p7 }
  0x78   : > { %p4182_p4 = pnand %p4181_p12, %p4175_p9 }
  0x7a   : > { %4185 = shalt.err (!%p4182_p4)
}
  0x7b   : > { %3971 = dma.hbm_to_vmem [thread:$0]  (!%p4723_p6), %s5621_s15, 16, %s4727_s29, [#allocation19]  }
  0x7c   : > { %s3451_s0 = sadd.s32 4294967294, %s4538_s25   ;;  %s4811_s5 = sadd.s32 1, %s4538_s25  }
  0x7d   : > { %5622 = sst [smem:[#allocation33_spill]] %s4811_s5  ;;  %s56_s28 = sadd.s32 1, %s4534_s24 }
  0x7e   : > { %s53_s22 = ssub.s32 %s4538_s25, %s4811_s5  ;;  %p63_p13 = scmp.ne.s32.totalorder %s4534_s24, %s4530_s30 }
  0x7f   : > { %p54_p0 = scmp.eq.s32.totalorder %s53_s22, 0  ;;  %p64_p2 = scmp.eq.s32.totalorder %s4538_s25, 0 }
  0x80   : > { %p69_p5 = scmp.ne.s32.totalorder %s4530_s30, %s4526_s4  ;;  %p575_p7 = scmp.eq.s32.totalorder %s4705_s26, 1 }
  0x81   : > { %s4823_s23 = scalar_select %p54_p0, %s4534_s24, %s56_s28  }
  0x82   : > { %p65_p9 = por %p64_p2, %p63_p13  ;;  %p4827_p10 = por %p5571_p1, %p69_p5 }
  0x83   : > { %5623 = sst [smem:[#allocation34_spill]] %s4823_s23  ;;  %p4831_p11 = por %p575_p7, %p63_p13 }
  0x84   : > { %s5624_s29 = scalar_select %p4827_p10, 1, 0 }
  0x85   : > { %s5625_s1 = scalar_select %p4831_p11, 1, 0 }
  0x86   : > { %p581_p12 = scmp.eq.s32.totalorder %s3451_s0, 1  ;;  %p4005_p4 = scmp.lt.s32.totalorder %s4538_s25, 2 }
  0x87   : > { %5626 = sst [smem:[#allocation35_spill]] %s5625_s1  ;;  %s5564_s27 = sand.u32 1, %s4534_s24  }
  0x88   : > { %p4837_p3 = por %p581_p12, %p69_p5  ;;  %s4843_s9 = sshll.u32 %s5564_s27, 3 }
  0x89   : > { %s4846_s3 = sshll.u32 %s4538_s25, 7  ;;  %p4848_p0 = pnand %p4005_p4, %p65_p9 }
  0x8a   : > { %s5627_s21 = scalar_select %p4837_p3, 1, 0 }
  0x8b   : > { %s5629_s28 = scalar_select %p4848_p0, 1, 0 }
  0x8c   : > { %5628 = sst [smem:[#allocation36_spill]] %s5627_s21  ;;  %s5573_s22 = sand.u32 1, %s4538_s25  }
  0x8d   : > { %s5630_s20 = sld [smem:[#allocation38_spill]]  ;;  %s739_s27 = scalar_lea.vmem [#allocation6], %s4843_s9 }
  0x8e   : > { %s746_s15 = sshll.u32 %s739_s27, 4  ;;  %s4864_s23 = scalar_lea.sflag [#allocation7], %s5573_s22  ;;  %s4860_s15 = int_to_ptr.vmem [resolvable:$true] %s746_s15 }
  0x8f   : > { %p4870_p2 = pneg %p4848_p0 }
  0x91   : > { %s5631_s21 = scalar_select %p4870_p2, 1, 0 }
  0x93   : > { %s4857_s13 = scalar_lea.hbm %s5630_s20, %s4846_s3  ;;  %s4191_s27 = scalar_lea.hbm %s5630_s20, 256 }
  0x94   : > { %s4186_s5 = scalar_lea.hbm %s4857_s13, 128  ;;  %p4192_p9 = scmp.lt.u32.totalorder %s4857_s13, %s5630_s20 }
  0x95   : > { %p4187_p13 = scmp.ne.s32.totalorder %s4857_s13, %s4186_s5  ;;  %p4193_p12 = scmp.lt.u32.totalorder %s4191_s27, %s4186_s5 }
  0x96   : > { %p4195_p1 = scmp.lt.u32.totalorder %s4186_s5, %s4857_s13 }
  0x97   : > { %p4189_p5 = pnand %p4870_p2, %p4187_p13  ;;  %p4194_p4 = por %p4193_p12, %p4192_p9 }
  0x99   : > { %p4190_p7 = pneg %p4189_p5  ;;  %p4196_p3 = por %p4195_p1, %p4194_p4 }
  0x9b   : > { %p4197_p11 = pnand %p4196_p3, %p4190_p7 }
  0x9d   : > { %4200 = shalt.err (!%p4197_p11)
}
  0x9e   : > { %s4201_s22 = scalar_lea.vmem %s4860_s15, 128  ;;  %s4545_s18 = smov [#allocation6]  }
  0x9f   : > { %p4202_p13 = scmp.ne.s32.totalorder %s4860_s15, %s4201_s22  ;;  %s4206_s0 = sshll.u32 %s4545_s18, 4  ;;  %s4207_s0 = int_to_ptr.vmem [resolvable:$false] %s4206_s0 }
  0xa0   : > { %s4208_s4 = scalar_lea.vmem %s4207_s0, 256  ;;  %p4209_p6 = scmp.lt.s32.totalorder %s4860_s15, %s4207_s0 }
  0xa1   : > { %p4204_p5 = pnand %p4202_p13, %p4870_p2  ;;  %p4210_p8 = scmp.lt.s32.totalorder %s4208_s4, %s4201_s22 }
  0xa3   : > { %p4205_p10 = pneg %p4204_p5  ;;  %p4211_p9 = por %p4210_p8, %p4209_p6 }
  0xa5   : > { %p4212_p12 = pnand %p4211_p9, %p4205_p10 }
  0xa7   : > { %4215 = shalt.err (!%p4212_p12)
}
  0xa8   : > { %3984 = dma.hbm_to_vmem [thread:$0]  (!%p4848_p0), %s4857_s13, 128, %s4860_s15, %s4864_s23  }
  0xa9   : > { %s5632_s27 = sld [smem:[#allocation40_spill]]  ;;  %s775_s22 = scalar_lea.vmem [#allocation9], %s4843_s9 }
  0xaa   : > { %s782_s0 = sshll.u32 %s775_s22, 4  ;;  %s4546_s4 = smov [#allocation14]   ;;  %s4901_s0 = int_to_ptr.vmem [resolvable:$true] %s782_s0 }
  0xab   : > { %s4903_s20 = sshll.u32 %s4546_s4, 4  ;;  %s5633_s19 = sand.u32 1, %s4538_s25   ;;  %s625_s20 = int_to_ptr.vmem [resolvable:$true] %s4903_s20 }
  0xac   : > { %s4907_s11 = scalar_lea.sflag [#allocation10], %s5633_s19 }
  0xaf   : > { %s4898_s18 = scalar_lea.hbm %s5632_s27, %s4846_s3  ;;  %s4221_s1 = scalar_lea.hbm %s5632_s27, 256 }
  0xb0   : > { %s4216_s13 = scalar_lea.hbm %s4898_s18, 128  ;;  %p4222_p8 = scmp.lt.u32.totalorder %s4898_s18, %s5632_s27 }
  0xb1   : > { %p4217_p1 = scmp.ne.s32.totalorder %s4898_s18, %s4216_s13  ;;  %p4223_p10 = scmp.lt.u32.totalorder %s4221_s1, %s4216_s13 }
  0xb2   : > { %p4225_p7 = scmp.lt.u32.totalorder %s4216_s13, %s4898_s18 }
  0xb3   : > { %p4219_p3 = pnand %p4217_p1, %p4870_p2  ;;  %p4224_p11 = por %p4223_p10, %p4222_p8 }
  0xb5   : > { %p4220_p6 = pneg %p4219_p3  ;;  %p4226_p4 = por %p4225_p7, %p4224_p11 }
  0xb7   : > { %p4227_p13 = pnand %p4226_p4, %p4220_p6 }
  0xb9   : > { %4230 = shalt.err (!%p4227_p13)
}
  0xba   : > { %s4231_s19 = scalar_lea.vmem %s4901_s0, 128  ;;  %s4547_s22 = smov [#allocation9]  }
  0xbb   : > { %p4232_p5 = scmp.ne.s32.totalorder %s4901_s0, %s4231_s19  ;;  %s4236_s4 = sshll.u32 %s4547_s22, 4  ;;  %s4237_s4 = int_to_ptr.vmem [resolvable:$false] %s4236_s4 }
  0xbc   : > { %s4238_s8 = scalar_lea.vmem %s4237_s4, 256  ;;  %p4239_p1 = scmp.lt.s32.totalorder %s4901_s0, %s4237_s4 }
  0xbd   : > { %p4234_p9 = pnand %p4232_p5, %p4870_p2  ;;  %p4240_p3 = scmp.lt.s32.totalorder %s4238_s8, %s4231_s19 }
  0xbf   : > { %p4235_p12 = pneg %p4234_p9  ;;  %p4241_p8 = por %p4240_p3, %p4239_p1 }
  0xc1   : > { %p4242_p10 = pnand %p4241_p8, %p4235_p12 }
  0xc3   : > { %4245 = shalt.err (!%p4242_p10)
}
  0xc4   : > { %3990 = dma.hbm_to_vmem [thread:$0]  (!%p4848_p0), %s4898_s18, 128, %s4901_s0, %s4907_s11  }
  0xc5   : > { %s5634_s10 = sld [smem:[#allocation47_spill]]  ;;  %p5635_p11 = scmp.ne.s32.totalorder %s5619_s6, 0 }
  0xcb   : > { %s4246_s15 = scalar_lea.hbm %s5634_s10, 16 }
  0xcc   : > { %p4247_p6 = scmp.ne.s32.totalorder %s5634_s10, %s4246_s15  ;;  %p4253_p13 = scmp.lt.u32.totalorder %s4246_s15, %s5634_s10 }
  0xce   : > { %p4249_p7 = pnand %p4247_p6, %p5635_p11 }
  0xd0   : > { %p4250_p4 = pneg %p4249_p7 }
  0xd2   : > { %p4255_p5 = pnand %p4253_p13, %p4250_p4 }
  0xd4   : > { %4258 = shalt.err (!%p4255_p5)
}
  0xd5   : > { %s4259_s4 = scalar_lea.vmem %s625_s20, 16  ;;  %s4266_s18 = scalar_lea.vmem %s625_s20, 32 }
  0xd6   : > { %p4260_p9 = scmp.ne.s32.totalorder %s625_s20, %s4259_s4  ;;  %p4267_p3 = scmp.lt.s32.totalorder %s625_s20, %s625_s20 }
  0xd7   : > { %p4268_p8 = scmp.lt.s32.totalorder %s4266_s18, %s4259_s4 }
  0xd8   : > { %p4262_p12 = pnand %p4260_p9, %p5635_p11 }
  0xd9   : > { %p4269_p10 = por %p4268_p8, %p4267_p3 }
  0xda   : > { %p4263_p1 = pneg %p4262_p12 }
  0xdc   : > { %p4270_p0 = pnand %p4269_p10, %p4263_p1 }
  0xde   : > { %4273 = shalt.err (!%p4270_p0)
}
  0xdf   : > { %p5636_p6 = scmp.ne.s32.totalorder %s5617_s7, 0  ;;  %s4548_s12 = smov [#allocation17]  }
  0xe0   : > { %s653_s13 = sshll.u32 %s4548_s12, 4  ;;  %s4549_s15 = smov [#allocation20]   ;;  %s654_s13 = int_to_ptr.vmem [resolvable:$true] %s653_s13 }
  0xe1   : > { %3962 = dma.hbm_to_vmem [thread:$0]  (!%p5636_p6), %s5634_s10, 16, %s625_s20, [#allocation13]  }
  0xe2   : > { %s678_s5 = sshll.u32 %s4549_s15, 4  ;;  %s4274_s22 = scalar_lea.hbm %s5540_s14, 512  ;;  %s679_s5 = int_to_ptr.vmem [resolvable:$true] %s678_s5 }
  0xe3   : > { %p4275_p0 = scmp.ne.s32.totalorder %s5540_s14, %s4274_s22  ;;  %p4281_p13 = scmp.lt.u32.totalorder %s4274_s22, %s5540_s14 }
  0xe5   : > { %p4277_p7 = pnand %p4275_p0, %p5635_p11 }
  0xe7   : > { %p4278_p4 = pneg %p4277_p7 }
  0xe9   : > { %p4283_p5 = pnand %p4281_p13, %p4278_p4 }
  0xeb   : > { %4286 = shalt.err (!%p4283_p5)
}
  0xec   : > { %s4287_s20 = scalar_lea.vmem %s654_s13, 512  ;;  %p4295_p3 = scmp.lt.s32.totalorder %s654_s13, %s654_s13 }
  0xed   : > { %p4288_p9 = scmp.ne.s32.totalorder %s654_s13, %s4287_s20  ;;  %p4296_p8 = scmp.lt.s32.totalorder %s4287_s20, %s4287_s20 }
  0xef   : > { %p4290_p12 = pnand %p4288_p9, %p5635_p11  ;;  %p4297_p10 = por %p4296_p8, %p4295_p3 }
  0xf1   : > { %p4291_p1 = pneg %p4290_p12 }
  0xf3   : > { %p4298_p2 = pnand %p4297_p10, %p4291_p1 }
  0xf5   : > { %4301 = shalt.err (!%p4298_p2)
}
  0xf6   : > { %s5637_s8 = smov 8   ;;  %s5638_s12 = smov 128  }
  0xf7   : > { %3968 = dma.hbm_to_vmem [thread:$0]  (!%p5636_p6), %s5540_s14, 512, %s654_s13, [#allocation16], %s5638_s12, %s5638_s12, %s5637_s8  }
  0xf8   : > { %s4302_s22 = scalar_lea.hbm %s5542_s16, 16 }
  0xf9   : > { %p4303_p0 = scmp.ne.s32.totalorder %s5542_s16, %s4302_s22  ;;  %p4309_p4 = scmp.lt.u32.totalorder %s4302_s22, %s5542_s16 }
  0xfb   : > { %p4305_p2 = pnand %p4303_p0, %p5635_p11 }
  0xfd   : > { %p4306_p7 = pneg %p4305_p2 }
  0xff   : > { %p4311_p13 = pnand %p4309_p4, %p4306_p7 }
 0x101   : > { %4314 = shalt.err (!%p4311_p13)
}
 0x102   : > { %s4315_s27 = scalar_lea.vmem %s679_s5, 16  ;;  %s4322_s13 = scalar_lea.vmem %s679_s5, 32 }
 0x103   : > { %p4316_p5 = scmp.ne.s32.totalorder %s679_s5, %s4315_s27  ;;  %p4323_p1 = scmp.lt.s32.totalorder %s679_s5, %s679_s5 }
 0x104   : > { %p4324_p3 = scmp.lt.s32.totalorder %s4322_s13, %s4315_s27 }
 0x105   : > { %p4318_p9 = pnand %p4316_p5, %p5635_p11 }
 0x106   : > { %p4325_p8 = por %p4324_p3, %p4323_p1 }
 0x107   : > { %p4319_p12 = pneg %p4318_p9 }
 0x109   : > { %p4326_p10 = pnand %p4325_p8, %p4319_p12 }
 0x10b   : > { %4329 = shalt.err (!%p4326_p10)
}
 0x10c   : > { %3974 = dma.hbm_to_vmem [thread:$0]  (!%p5636_p6), %s5542_s16, 16, %s679_s5, [#allocation19]  }
 0x10d   : > { %s4550_s19 = smov [#allocation21]   ;;  %s4330_s0 = scalar_lea.hbm %s5543_s17, 512 }
 0x10e   : > { %s688_s22 = sshll.u32 %s4550_s19, 4  ;;  %p4331_p0 = scmp.ne.s32.totalorder %s5543_s17, %s4330_s0  ;;  %s689_s22 = int_to_ptr.vmem [resolvable:$true] %s688_s22 }
 0x10f   : > { %p4337_p4 = scmp.lt.u32.totalorder %s4330_s0, %s5543_s17 }
 0x110   : > { %p4333_p2 = pnand %p4331_p0, %p5635_p11 }
 0x112   : > { %p4334_p7 = pneg %p4333_p2 }
 0x114   : > { %p4339_p13 = pnand %p4337_p4, %p4334_p7 }
 0x116   : > { %4342 = shalt.err (!%p4339_p13)
}
 0x117   : > { %s4343_s5 = scalar_lea.vmem %s689_s22, 512  ;;  %p4351_p1 = scmp.lt.s32.totalorder %s689_s22, %s689_s22 }
 0x118   : > { %p4344_p5 = scmp.ne.s32.totalorder %s689_s22, %s4343_s5  ;;  %p4352_p3 = scmp.lt.s32.totalorder %s4343_s5, %s4343_s5 }
 0x11a   : > { %p4346_p9 = pnand %p4344_p5, %p5635_p11  ;;  %p4353_p8 = por %p4352_p3, %p4351_p1 }
 0x11c   : > { %p4347_p12 = pneg %p4346_p9 }
 0x11e   : > { %p4354_p10 = pnand %p4353_p8, %p4347_p12 }
 0x120   : > { %4357 = shalt.err (!%p4354_p10)
}
 0x121   : > { %3977 = dma.hbm_to_vmem [thread:$0]  (!%p5636_p6), %s5543_s17, 512, %s689_s22, [#allocation22], %s5638_s12, %s5638_s12, %s5637_s8  }
 0x122   : > { %s5639_s19 = sld [smem:[#allocation37_spill]]  ;;  %s721_s7 = scalar_lea.vmem [#allocation3], %s4843_s9 }
 0x123   : > { %s728_s18 = sshll.u32 %s721_s7, 4  ;;  %s5640_s0 = sand.u32 1, %s4534_s24   ;;  %s729_s18 = int_to_ptr.vmem [resolvable:$true] %s728_s18 }
 0x124   : > { %s718_s20 = scalar_lea.sflag [#allocation4], %s5640_s0  ;;  %p5641_p0 = scmp.ne.s32.totalorder %s5631_s21, 0 }
 0x128   : > { %s5014_s4 = scalar_lea.hbm %s5639_s19, %s4846_s3  ;;  %s4363_s22 = scalar_lea.hbm %s5639_s19, 256 }
 0x129   : > { %s4358_s27 = scalar_lea.hbm %s5014_s4, 128  ;;  %p4364_p6 = scmp.lt.u32.totalorder %s5014_s4, %s5639_s19 }
 0x12a   : > { %p4359_p11 = scmp.ne.s32.totalorder %s5014_s4, %s4358_s27  ;;  %p4365_p4 = scmp.lt.u32.totalorder %s4363_s22, %s4358_s27 }
 0x12b   : > { %p4367_p5 = scmp.lt.u32.totalorder %s4358_s27, %s5014_s4 }
 0x12c   : > { %p4361_p2 = pnand %p4359_p11, %p5641_p0  ;;  %p4366_p13 = por %p4365_p4, %p4364_p6 }
 0x12e   : > { %p4362_p7 = pneg %p4361_p2  ;;  %p4368_p9 = por %p4367_p5, %p4366_p13 }
 0x130   : > { %p4369_p12 = pnand %p4368_p9, %p4362_p7 }
 0x132   : > { %4372 = shalt.err (!%p4369_p12)
}
 0x133   : > { %s4373_s10 = scalar_lea.vmem %s729_s18, 128  ;;  %s4551_s15 = smov [#allocation3]  }
 0x134   : > { %p4374_p1 = scmp.ne.s32.totalorder %s729_s18, %s4373_s10  ;;  %s4378_s6 = sshll.u32 %s4551_s15, 4  ;;  %s4379_s6 = int_to_ptr.vmem [resolvable:$false] %s4378_s6 }
 0x135   : > { %s4380_s1 = scalar_lea.vmem %s4379_s6, 256  ;;  %p4381_p10 = scmp.lt.s32.totalorder %s729_s18, %s4379_s6 }
 0x136   : > { %p4376_p3 = pnand %p4374_p1, %p5641_p0  ;;  %p4382_p11 = scmp.lt.s32.totalorder %s4380_s1, %s4373_s10 }
 0x138   : > { %p4377_p8 = pneg %p4376_p3  ;;  %p4383_p2 = por %p4382_p11, %p4381_p10 }
 0x13a   : > { %p4384_p4 = pnand %p4383_p2, %p4377_p8 }
 0x13c   : > { %4387 = shalt.err (!%p4384_p4)
}
 0x13d   : > { %p5642_p6 = scmp.ne.s32.totalorder %s5629_s28, 0  ;;  %s5643_s27 = sld [smem:[#allocation39_spill]] }
 0x13e   : > { %s757_s12 = scalar_lea.vmem [#allocation8], %s4843_s9 }
 0x13f   : > { %3981 = dma.hbm_to_vmem [thread:$0]  (!%p5642_p6), %s5014_s4, 128, %s729_s18, %s718_s20  }
 0x140   : > { %s764_s22 = sshll.u32 %s757_s12, 4  ;;  %s765_s22 = int_to_ptr.vmem [resolvable:$true] %s764_s22 }
 0x143   : > { %s5040_s8 = scalar_lea.hbm %s5643_s27, %s4846_s3  ;;  %s4393_s4 = scalar_lea.hbm %s5643_s27, 256 }
 0x144   : > { %s4388_s13 = scalar_lea.hbm %s5040_s8, 128  ;;  %p4394_p9 = scmp.lt.u32.totalorder %s5040_s8, %s5643_s27 }
 0x145   : > { %p4389_p7 = scmp.ne.s32.totalorder %s5040_s8, %s4388_s13  ;;  %p4395_p12 = scmp.lt.u32.totalorder %s4393_s4, %s4388_s13 }
 0x146   : > { %p4397_p3 = scmp.lt.u32.totalorder %s4388_s13, %s5040_s8 }
 0x147   : > { %p4391_p13 = pnand %p4389_p7, %p5641_p0  ;;  %p4396_p1 = por %p4395_p12, %p4394_p9 }
 0x149   : > { %p4392_p5 = pneg %p4391_p13  ;;  %p4398_p8 = por %p4397_p3, %p4396_p1 }
 0x14b   : > { %p4399_p10 = pnand %p4398_p8, %p4392_p5 }
 0x14d   : > { %4402 = shalt.err (!%p4399_p10)
}
 0x14e   : > { %s4403_s15 = scalar_lea.vmem %s765_s22, 128  ;;  %s4552_s6 = smov [#allocation8]  }
 0x14f   : > { %p4404_p11 = scmp.ne.s32.totalorder %s765_s22, %s4403_s15  ;;  %s4408_s1 = sshll.u32 %s4552_s6, 4  ;;  %s4409_s1 = int_to_ptr.vmem [resolvable:$false] %s4408_s1 }
 0x150   : > { %s4410_s7 = scalar_lea.vmem %s4409_s1, 256  ;;  %p4411_p7 = scmp.lt.s32.totalorder %s765_s22, %s4409_s1 }
 0x151   : > { %p4406_p2 = pnand %p4404_p11, %p5641_p0  ;;  %p4412_p13 = scmp.lt.s32.totalorder %s4410_s7, %s4403_s15 }
 0x153   : > { %p4407_p4 = pneg %p4406_p2  ;;  %p4413_p6 = por %p4412_p13, %p4411_p7 }
 0x155   : > { %p4414_p9 = pnand %p4413_p6, %p4407_p4 }
 0x157   : > { %4417 = shalt.err (!%p4414_p9)
}
 0x158   : > { %p5644_p12 = scmp.ne.s32.totalorder %s5629_s28, 0  ;;  %s5645_s13 = sld [smem:[#allocation41_spill]] }
 0x159   : > { %s793_s10 = scalar_lea.vmem [#allocation11], %s4843_s9 }
 0x15a   : > { %3987 = dma.hbm_to_vmem [thread:$0]  (!%p5644_p12), %s5040_s8, 128, %s765_s22, %s4864_s23  }
 0x15b   : > { %s800_s4 = sshll.u32 %s793_s10, 4  ;;  %s801_s4 = int_to_ptr.vmem [resolvable:$true] %s800_s4 }
 0x15e   : > { %s5065_s5 = scalar_lea.hbm %s5645_s13, %s4846_s3  ;;  %s4423_s23 = scalar_lea.hbm %s5645_s13, 256 }
 0x15f   : > { %s4418_s18 = scalar_lea.hbm %s5065_s5, 128  ;;  %p4424_p3 = scmp.lt.u32.totalorder %s5065_s5, %s5645_s13 }
 0x160   : > { %p4419_p6 = scmp.ne.s32.totalorder %s5065_s5, %s4418_s18  ;;  %p4425_p8 = scmp.lt.u32.totalorder %s4423_s23, %s4418_s18 }
 0x161   : > { %p4427_p11 = scmp.lt.u32.totalorder %s4418_s18, %s5065_s5 }
 0x162   : > { %p4421_p5 = pnand %p4419_p6, %p5641_p0  ;;  %p4426_p10 = por %p4425_p8, %p4424_p3 }
 0x164   : > { %p4422_p1 = pneg %p4421_p5  ;;  %p4428_p2 = por %p4427_p11, %p4426_p10 }
 0x166   : > { %p4429_p4 = pnand %p4428_p2, %p4422_p1 }
 0x168   : > { %4432 = shalt.err (!%p4429_p4)
}
 0x169   : > { %s4433_s9 = scalar_lea.vmem %s801_s4, 128  ;;  %s4553_s3 = smov [#allocation11]  }
 0x16a   : > { %p4434_p7 = scmp.ne.s32.totalorder %s801_s4, %s4433_s9  ;;  %s4438_s6 = sshll.u32 %s4553_s3, 4  ;;  %s4439_s6 = int_to_ptr.vmem [resolvable:$false] %s4438_s6 }
 0x16b   : > { %s4440_s1 = scalar_lea.vmem %s4439_s6, 256  ;;  %p4441_p6 = scmp.lt.s32.totalorder %s801_s4, %s4439_s6 }
 0x16c   : > { %p4436_p13 = pnand %p4434_p7, %p5641_p0  ;;  %p4442_p5 = scmp.lt.s32.totalorder %s4440_s1, %s4433_s9 }
 0x16e   : > { %p4437_p9 = pneg %p4436_p13  ;;  %p4443_p12 = por %p4442_p5, %p4441_p6 }
 0x170   : > { %p4444_p3 = pnand %p4443_p12, %p4437_p9 }
 0x172   : > { %4447 = shalt.err (!%p4444_p3)
}
 0x173   : > { %p5646_p8 = scmp.ne.s32.totalorder %s5629_s28, 0  ;;  %p5647_p1 = scmp.ne.s32.totalorder %s5616_s2, 0 }
 0x174   : > { %s5089_s21 = sand.u32 (!%p5647_p1), 1, %s4530_s30   ;;  %p5648_p0 = scmp.ne.s32.totalorder (!%p5647_p1), %s5624_s29, 0 }
 0x175   : > { %3993 = dma.hbm_to_vmem [thread:$0]  (!%p5646_p8), %s5065_s5, 128, %s801_s4, %s4907_s11  }
 0x176   : > { %809 = sbr.rel (%p5647_p1) target bundleno = 4641 (0x1221), region = 112  ;;  %s5092_s7 = sshll.u32 (!%p5647_p1), %s5089_s21, 3 }
 0x177   : > { %s812_s0 = scalar_lea.sflag (!%p5647_p1), [#allocation4], %s5089_s21  ;;  %s815_s12 = scalar_lea.vmem (!%p5647_p1), [#allocation3], %s5092_s7 }
 0x17d   : > { %4493 = dma.done.wait (%p5648_p0), %s812_s0, 128  }
 0x17e   : > { %4495 = vsyncadd (%p5648_p0), %s812_s0, 4294967168  ;;  %s820_s11 = sand.u32 1, %s4705_s26   ;;  %s824_s28 = scalar_lea.vmem [#allocation6], %s5092_s7 }
 0x17f   : > { %s821_s2 = scalar_lea.sflag [#allocation7], %s820_s11 }
 0x180   : > { %4497 = dma.done.wait (%p5648_p0), %s821_s2, 256  }
 0x181   : > { %4499 = vsyncadd (%p5648_p0), %s821_s2, 4294967040  ;;  %s833_s5 = scalar_lea.vmem [#allocation8], %s5092_s7  ;;  %s839_s10 = scalar_lea.sflag [#allocation10], %s820_s11 }
 0x182   : > { %s842_s4 = scalar_lea.vmem [#allocation9], %s5092_s7 }
 0x183   : > { %4501 = dma.done.wait (%p5648_p0), %s839_s10, 256  }
 0x184   : > { %4503 = vsyncadd (%p5648_p0), %s839_s10, 4294967040  ;;  %p5649_p12 = scmp.eq.s32.totalorder %s4705_s26, 0 }
 0x186   : > { %4505 = dma.done.wait (%p5649_p12), [#allocation13], 32   ;;  %p5650_p10 = pmov %p5649_p12 }
 0x188   : > { %4507 = vsyncadd (%p5650_p10), [#allocation13], 4294967264  ;;  %p5651_p11 = pmov %p5650_p10 }
 0x189   : > { %p5652_p2 = pmov %p5650_p10 }
 0x18a   : > { %4509 = dma.done.wait (%p5651_p11), [#allocation16], 1024  }
 0x18b   : > { %4511 = vsyncadd (%p5652_p2), [#allocation16], 4294966272  ;;  %p5653_p4 = pmov %p5652_p2 }
 0x18c   : > { %p5654_p7 = pmov %p5652_p2 }
 0x18d   : > { %4513 = dma.done.wait (%p5653_p4), [#allocation19], 32  }
 0x18e   : > { %4515 = vsyncadd (%p5654_p7), [#allocation19], 4294967264  ;;  %p5655_p13 = pmov %p5652_p2 }
 0x18f   : > { %p5656_p9 = pmov %p5652_p2 }
 0x190   : > { %4517 = dma.done.wait (%p5655_p13), [#allocation22], 512  }
 0x191   : > { %4519 = vsyncadd (%p5656_p9), [#allocation22], 4294966784  ;;  %v4554_v0 = vmov 0.0|0.0   ;;  %vm4555_vm0 = vmmov 0   ;;  %v4556_v1 = vmov 0.0   ;;  %s5657_s15 = sld [smem:[#allocation44_spill]] }
 0x192   : > { %3838 = vmatprep.subr.bf16.mxu1 %v4554_v0  ;;  %3632 = vmatprep.mubr.msk.f32.mxu1 %vm4555_vm0, %v4556_v1  ;;  %s5658_s11 = sld [smem:[#allocation43_spill]]  ;;  %v5156_v10 = vld [vmem:[%s815_s12] sm:$0xff]  ;;  %vm982_vm1 = vcmask 261120   ;;  %s5659_s9 = sld [smem:[#allocation42_spill]]  ;;  %vm1197_vm2 = vcmask 64512   ;;  %v965_v33 = vld [vmem:[%s842_s4] sm:$0xff] }
 0x193   : > { %3667 = vmatprep.subr.mxu0 %v4556_v1  ;;  %3669 = vmatprep.mubr.msk.f32.mxu0 %vm4555_vm0, %v4556_v1  ;;  %s4557_s29 = smov 112   ;;  %s4558_s20 = smov 120   ;;  %vm1196_vm3 = vcmp.eq.f32.partialorder %v965_v33, 0.0  ;;  %vm1533_vm4 = vcmask 130112   ;;  %vm1706_vm5 = vcmask 195712   ;;  %vm1879_vm6 = vcmask 261312  }
 0x194   : > { %s4559_s23 = smov 104   ;;  %s5660_s12 = sld [smem:[#allocation45_spill]] }
 0x195   : > { %s5591_s10 = smov 8   ;;  %s5590_s4 = smov 16  }
 0x196   : > { %s5589_s8 = smov 24   ;;  %s5661_s6 = sld [smem:[#allocation49_spill]] }
 0x197   : > { %v966_v2 = vld [vmem:[%s5657_s15] sm:$0xff]  ;;  %v967_v3 = vld [vmem:[%s5657_s15 + $0x8] sm:$0xff]  ;;  %v968_v4 = vld [vmem:[%s5657_s15 + $0x10] sm:$0xff]  ;;  %s5665_s18 = smov 8   ;;  %s5672_s1 = sld [smem:[#allocation55_spill]] }
 0x198   : > { %v3839_v5 = vpack.c.bf16 %v967_v3, %v966_v2  ;;  %v969_v6 = vld [vmem:[%s5657_s15 + $0x18] sm:$0xff]  ;;  %v970_v8 = vld [vmem:[%s5658_s11] sm:$0xff]  ;;  %v971_v9 = vld [vmem:[%s5658_s11 + $0x8] sm:$0xff]  ;;  %s3215_s22 = scalar_lea.sflag [#allocation5], %s5089_s21 }
 0x199   : > { %v3842_v7 = vpack.c.bf16 %v969_v6, %v968_v4  ;;  %v3845_v11 = vpack.c.bf16 %v971_v9, %v970_v8  ;;  %v972_v12 = vld [vmem:[%s5658_s11 + $0x10] sm:$0xff]  ;;  %v973_v13 = vld [vmem:[%s5658_s11 + $0x18] sm:$0xff]  ;;  %v974_v15 = vld [vmem:[%s5659_s9] sm:$0xff] }
 0x19a   : > { %3840 = vmatpush3.bf16.msra.mxu1 %v3839_v5  ;;  %v3848_v14 = vpack.c.bf16 %v973_v13, %v972_v12  ;;  %v975_v16 = vld [vmem:[%s5659_s9 + $0x8] sm:$0xff]  ;;  %v976_v18 = vld [vmem:[%s5659_s9 + $0x10] sm:$0xff]  ;;  %v977_v19 = vld [vmem:[%s5659_s9 + $0x18] sm:$0xff] }
 0x19b   : > { %3841 = vmatprep.subr.bf16.mxu1 %v4554_v0  ;;  %v3851_v17 = vpack.c.bf16 %v975_v16, %v974_v15  ;;  %v3854_v20 = vpack.c.bf16 %v977_v19, %v976_v18  ;;  %v980_v33 = vld [vmem:[%s5660_s12 + $0x10] sm:$0xff] }
 0x19e   : > { %3843 = vmatpush3.bf16.msra.mxu1 %v3842_v7 }
 0x19f   : > { %3844 = vmatprep.subr.bf16.mxu1 %v4554_v0 }
 0x1a1   : > { %3633 = vmatmul.mubr.msk.f32.vlgmr.msra.gmra.mrb[0].mxu1 %vm982_vm1, %v5156_v10 }
 0x1a2   : > { %3846 = vmatpush3.bf16.msra.mxu1 %v3845_v11  ;;  %3643 = vmatprep.mubr.msk.f32.mxu1 %vm4555_vm0, %v4556_v1 }
 0x1a3   : > { %3847 = vmatprep.subr.bf16.mxu1 %v4554_v0 }
 0x1a6   : > { %3849 = vmatpush3.bf16.msra.mxu1 %v3848_v14 }
 0x1a7   : > { %3850 = vmatprep.subr.bf16.mxu1 %v4554_v0 }
 0x1a9   : > { %3644 = vmatmul.mubr.msk.f32.vlgmr.msra.gmra.mrb[2].mxu1 %vm982_vm1, %v5156_v10 }
 0x1aa   : > { %3852 = vmatpush3.bf16.msra.mxu1 %v3851_v17  ;;  %3654 = vmatprep.mubr.msk.f32.mxu1 %vm4555_vm0, %v4556_v1 }
 0x1ab   : > { %3853 = vmatprep.subr.bf16.mxu1 %v4554_v0 }
 0x1ae   : > { %3855 = vmatpush3.bf16.msra.mxu1 %v3854_v20 }
 0x1af   : > { %3657 = vmatprep.subr.mxu1 %v4556_v1 }
 0x1b1   : > { %3655 = vmatmul.mubr.msk.f32.vlgmr.msra.gmra.mrb[4].mxu1 %vm982_vm1, %v5156_v10 }
 0x1b2   : > { %3659 = vmatprep.mubr.msk.f32.mxu1 %vm4555_vm0, %v4556_v1 }
 0x274   : > { %v1052_v21 = vpop.f32.mrb[0].mxu1 }
 0x275   : > { %v3634_v22 = vpop.f32.mrb[1].mxu1 }
 0x27c   : > { %v1122_v23 = vpop.f32.mrb[2].mxu1 }
 0x27d   : > { %1537 = vrot.lane.b32.xlu1 %v1122_v23, %s4557_s29  ;;  %1363 = vrot.lane.b32.xlu0 %v1122_v23, %s4558_s20  ;;  %v3645_v24 = vpop.f32.mrb[3].mxu1 }
 0x27e   : > { %3658 = vmatpush3.xpose.msk.msra.mxu1 %vm1197_vm2, %v1122_v23 }
 0x27f   : > { %3662 = vmatprep.subr.mxu1 %v4556_v1 }
 0x281   : > { %3660 = vmatmul.mubr.msk.f32.vlgmr.msra.gmra.mrb[6].mxu1 %vm1197_vm2, %v1052_v21  ;;  %1535 = vrot.lane.b32.xlu1 %v1052_v21, %s4557_s29 }
 0x282   : > { %1361 = vrot.lane.b32.xlu0 %v1052_v21, %s4558_s20  ;;  %3664 = vmatprep.mubr.msk.f32.mxu1 %vm4555_vm0, %v4556_v1 }
 0x284   : > { %v5204_v25 = vpop.f32.mrb[4].mxu1 }
 0x285   : > { %1708 = vrot.lane.b32.xlu1 %v1052_v21, %s4559_s23  ;;  %v3656_v26 = vpop.f32.mrb[5].mxu1  ;;  %3663 = vmatpush3.msra.mxu1 %v5204_v25 }
 0x286   : > { %1710 = vrot.lane.b32.xlu0 %v1122_v23, %s4559_s23  ;;  %3672 = vmatprep.subr.mxu1 %v4556_v1 }
 0x2ef   : > { %v1364_v27 = vpop.permute.xlu0 %1363  ;;  %v1538_v28 = vpop.permute.xlu1 %1537 }
 0x2f0   : > { %3668 = vmatpush3.xpose.msk.msra.mxu0 %vm1197_vm2, %v1364_v27 }
 0x2f1   : > { %3677 = vmatprep.subr.mxu0 %v4556_v1 }
 0x2f3   : > { %v1536_v30 = vpop.permute.xlu1 %1535 }
 0x2f4   : > { %v1362_v29 = vpop.permute.xlu0 %1361 }
 0x2f5   : > { %3670 = vmatmul.mubr.msk.f32.vlgmr.msra.gmra.mrb[0].mxu0 %vm1197_vm2, %v1362_v29 }
 0x2f6   : > { %3678 = vmatpush3.xpose.msk.msra.mxu0 %vm1197_vm2, %v1538_v28  ;;  %3679 = vmatprep.mubr.msk.f32.mxu0 %vm4555_vm0, %v4556_v1 }
 0x2f7   : > { %3687 = vmatprep.subr.mxu0 %v4556_v1  ;;  %v1709_v32 = vpop.permute.xlu1 %1708 }
 0x2f8   : > { %v1711_v31 = vpop.permute.xlu0 %1710 }
 0x2f9   : > { %3680 = vmatmul.mubr.msk.f32.vlgmr.msra.gmra.mrb[2].mxu0 %vm1197_vm2, %v1536_v30  ;;  %v978_v30 = vld [vmem:[%s5660_s12] sm:$0xff] }
 0x2fa   : > { %3688 = vmatpush3.xpose.msk.msra.mxu0 %vm1197_vm2, %v1711_v31  ;;  %3689 = vmatprep.mubr.msk.f32.mxu0 %vm4555_vm0, %v4556_v1  ;;  %v979_v31 = vld [vmem:[%s5660_s12 + $0x8] sm:$0xff] }
 0x2fb   : > { %3856 = vmatprep.subr.bf16.mxu0 %v4554_v0 }
 0x2fd   : > { %3690 = vmatmul.mubr.msk.f32.vlgmr.msra.gmra.mrb[4].mxu0 %vm1197_vm2, %v1709_v32  ;;  %v3857_v32 = vpack.c.bf16 %v979_v31, %v978_v30 }
 0x2fe   : > { %3705 = vmatprep.mubr.msk.f32.mxu0 %vm4555_vm0, %v4556_v1 }
 0x2ff   : > { %3858 = vmatpush3.bf16.msra.mxu0 %v3857_v32 }
 0x300   : > { %3859 = vmatprep.subr.bf16.mxu0 %v4554_v0 }
 0x354   : > { %v1270_v34 = vpop.f32.mrb[6].mxu1 }
 0x355   : > { %v1274_v35 = vsel %vm1196_vm3, -1e+20, %v1270_v34  ;;  %v3661_v36 = vpop.f32.mrb[7].mxu1  ;;  %v981_v34 = vld [vmem:[%s5660_s12 + $0x18] sm:$0xff] }
 0x356   : > { %v1275_v37 = vmul.f32 0.17677669, %v1274_v35  ;;  %v3860_v35 = vpack.c.bf16 %v981_v34, %v980_v33 }
 0x358   : > { %v1276_v38 = vsel %vm1197_vm2, %v1275_v37, -inf  ;;  %3861 = vmatpush3.bf16.msra.mxu0 %v3860_v35 }
 0x359   : > { %1277 = vmax.xlane.f32.xlu0 %v1276_v38  ;;  %3868 = vmatprep.subr.bf16.mxu0 %v4554_v0 }
 0x3c8   : > { %v1435_v39 = vpop.f32.mrb[0].mxu0 }
 0x3c9   : > { %v1439_v40 = vsel %vm1196_vm3, -1e+20, %v1435_v39  ;;  %v3671_v41 = vpop.f32.mrb[1].mxu0 }
 0x3ca   : > { %v1440_v42 = vmul.f32 0.17677669, %v1439_v40 }
 0x3cc   : > { %v1609_v43 = vpop.f32.mrb[2].mxu0  ;;  %v1441_v44 = vsel %vm1197_vm2, %v1440_v42, -inf }
 0x3cd   : > { %v1613_v45 = vsel %vm1196_vm3, -1e+20, %v1609_v43  ;;  %1442 = vmax.xlane.f32.xlu1 %v1441_v44  ;;  %v3681_v46 = vpop.f32.mrb[3].mxu0 }
 0x3ce   : > { %v1614_v47 = vmul.f32 0.17677669, %v1613_v45 }
 0x3d0   : > { %v1782_v48 = vpop.f32.mrb[4].mxu0  ;;  %v1615_v49 = vsel %vm1197_vm2, %v1614_v47, -inf }
 0x3d1   : > { %v1786_v50 = vsel %vm1196_vm3, -1e+20, %v1782_v48  ;;  %v3691_v51 = vpop.f32.mrb[5].mxu0  ;;  %1616 = vmax.xlane.f32.xlu0 %v1615_v49 }
 0x3d2   : > { %v1787_v52 = vmul.f32 0.17677669, %v1786_v50 }
 0x3d4   : > { %v1788_v53 = vsel %vm1197_vm2, %v1787_v52, -inf }
 0x3d5   : > { %1789 = vmax.xlane.f32.xlu0 %v1788_v53 }
 0x3de   : > { %1453 = vrot.lane.b32.xlu1 %v5204_v25, %s4558_s20 }
 0x3e6   : > { %v1278_v54 = vpop.xlane.xlu0 %1277 }
 0x3e7   : > { %v1279_v55 = vsub.f32 %v1275_v37, %v1278_v54 }
 0x3e9   : > { %v1280_v56 = vmul.f32 1.442695, %v1279_v55  ;;  %v1990_v55 = vld [vmem:[%s5661_s6] sm:$0xff] }
 0x3eb   : > { %4064 = vpow2.f32 %v1280_v56 }
 0x3f5   : > { %v4065_v57 = vpop.eup %4064 }
 0x3f6   : > { %v1282_v58 = vsel %vm1197_vm2, %v4065_v57, 0.0 }
 0x402   : > { %1283 = vadd.xlane.f32.xlu1 %v1282_v58  ;;  %v1993_v58 = vld [vmem:[%s5661_s6 + $0x18] sm:$0xff] }
 0x45a   : > { %v1443_v59 = vpop.xlane.xlu1 %1442 }
 0x45b   : > { %v1444_v60 = vsub.f32 %v1440_v42, %v1443_v59 }
 0x45d   : > { %v1445_v61 = vmul.f32 1.442695, %v1444_v60  ;;  %v964_v60 = vld [vmem:[%s833_s5] sm:$0xff]  ;;  %s5670_s5 = sld [smem:[#allocation54_spill]] }
 0x45e   : > { %v1617_v62 = vpop.xlane.xlu0 %1616  ;;  %v1454_v13 = vpop.permute.xlu1 %1453 }
 0x45f   : > { %4066 = vpow2.f32 %v1445_v61  ;;  %v1618_v63 = vsub.f32 %v1614_v47, %v1617_v62  ;;  %v1986_v61 = vld [vmem:[#allocation15] sm:$0xff]  ;;  %v1987_v62 = vld [vmem:[#allocation15 + $0x8] sm:$0xff] }
 0x461   : > { %v1619_v2 = vmul.f32 1.442695, %v1618_v63  ;;  %v3863_v63 = vpack.c.bf16 %v1987_v62, %v1986_v61 }
 0x462   : > { %v1790_v3 = vpop.xlane.xlu0 %1789 }
 0x463   : > { %4068 = vpow2.f32 %v1619_v2  ;;  %v1791_v4 = vsub.f32 %v1787_v52, %v1790_v3  ;;  %v1988_v2 = vld [vmem:[#allocation15 + $0x10] sm:$0xff]  ;;  %v1989_v3 = vld [vmem:[#allocation15 + $0x18] sm:$0xff] }
 0x465   : > { %v1792_v5 = vmul.f32 1.442695, %v1791_v4  ;;  %v3866_v4 = vpack.c.bf16 %v1989_v3, %v1988_v2 }
 0x467   : > { %4070 = vpow2.f32 %v1792_v5 }
 0x469   : > { %v4067_v6 = vpop.eup %4066 }
 0x46a   : > { %v1447_v7 = vsel %vm1197_vm2, %v4067_v6, 0.0 }
 0x46b   : > { %1448 = vadd.xlane.f32.xlu0 %v1447_v7 }
 0x46d   : > { %v4069_v8 = vpop.eup %4068 }
 0x46e   : > { %v1621_v9 = vsel %vm1197_vm2, %v4069_v8, 0.0 }
 0x46f   : > { %1622 = vadd.xlane.f32.xlu1 %v1621_v9  ;;  %v3501_v9 = vld [vmem:[#allocation12] ss:$0 sm:$0xff] }
 0x471   : > { %v4071_v11 = vpop.eup %4070 }
 0x472   : > { %v1794_v12 = vsel %vm1197_vm2, %v4071_v11, 0.0 }
 0x473   : > { %1795 = vadd.xlane.f32.xlu0 %v1794_v12  ;;  %v3502_v12 = vld [vmem:[#allocation14] ss:$0 sm:$0xff] }
 0x480   : > { %1799 = vrot.lane.b32.xlu1 %v5204_v25, %s4559_s23 }
 0x489   : > { %1626 = vrot.lane.b32.xlu0 %v5204_v25, %s4557_s29 }
 0x48f   : > { %v1284_v14 = vpop.xlane.xlu1 %1283 }
 0x490   : > { %4072 = vrcp.f32 %v1284_v14 }
 0x49a   : > { %v4073_v15 = vpop.eup %4072 }
 0x49b   : > { %v1286_v16 = vmul.f32 %v4073_v15, %v4065_v57  ;;  %v1992_v57 = vld [vmem:[%s5661_s6 + $0x10] sm:$0xff] }
 0x49c   : > { %v3872_v59 = vpack.c.bf16 %v1993_v58, %v1992_v57 }
 0x49d   : > { %3665 = vmatmul.mubr.msk.f32.vlgmr.msra.gmra.mrb[8].mxu1 %vm1197_vm2, %v1286_v16 }
 0x49e   : > { %3673 = vmatpush3.msra.mxu1 %v1454_v13  ;;  %3674 = vmatprep.mubr.msk.f32.mxu1 %vm4555_vm0, %v4556_v1 }
 0x49f   : > { %3682 = vmatprep.subr.mxu1 %v4556_v1 }
 0x4f8   : > { %v1449_v17 = vpop.xlane.xlu0 %1448 }
 0x4f9   : > { %4074 = vrcp.f32 %v1449_v17 }
 0x4fc   : > { %v1623_v18 = vpop.xlane.xlu1 %1622 }
 0x4fd   : > { %4076 = vrcp.f32 %v1623_v18 }
 0x500   : > { %v1796_v19 = vpop.xlane.xlu0 %1795  ;;  %v1800_v25 = vpop.permute.xlu1 %1799 }
 0x501   : > { %4078 = vrcp.f32 %v1796_v19 }
 0x503   : > { %v4075_v20 = vpop.eup %4074 }
 0x504   : > { %v1451_v21 = vmul.f32 %v4075_v20, %v4067_v6  ;;  %v1627_v22 = vpop.permute.xlu0 %1626 }
 0x506   : > { %3675 = vmatmul.mubr.msk.f32.vlgmr.msra.gmra.mrb[10].mxu1 %vm1197_vm2, %v1451_v21 }
 0x507   : > { %v4077_v23 = vpop.eup %4076  ;;  %3683 = vmatpush3.msra.mxu1 %v1627_v22  ;;  %3684 = vmatprep.mubr.msk.f32.mxu1 %vm4555_vm0, %v4556_v1 }
 0x508   : > { %v1625_v24 = vmul.f32 %v4077_v23, %v4069_v8  ;;  %3692 = vmatprep.subr.mxu1 %v4556_v1 }
 0x50a   : > { %3685 = vmatmul.mubr.msk.f32.vlgmr.msra.gmra.mrb[12].mxu1 %vm1197_vm2, %v1625_v24 }
 0x50b   : > { %v4079_v26 = vpop.eup %4078  ;;  %3693 = vmatpush3.msra.mxu1 %v1800_v25  ;;  %3694 = vmatprep.mubr.msk.f32.mxu1 %vm4555_vm0, %v4556_v1 }
 0x50c   : > { %v1798_v27 = vmul.f32 %v4079_v26, %v4071_v11  ;;  %3862 = vmatprep.subr.bf16.mxu1 %v4554_v0  ;;  %v963_v26 = vld [vmem:[%s824_s28] sm:$0xff]  ;;  %s5664_s28 = scalar_lea.vmem [#allocation11], %s5092_s7 }
 0x50d   : > { %v1985_v32 = vld [vmem:[%s5664_s28] sm:$0xff]  ;;  %s5673_s28 = sld [smem:[#allocation56_spill]] }
 0x50e   : > { %3695 = vmatmul.mubr.msk.f32.vlgmr.msra.gmra.mrb[14].mxu1 %vm1197_vm2, %v1798_v27  ;;  %vm2221_vm7 = vcmp.eq.f32.partialorder %v1985_v32, 0.0  ;;  %v1999_v32 = vld [vmem:[#allocation17 + $0x8] sm:$0xff] }
 0x50f   : > { %3716 = vmatprep.mubr.msk.f32.mxu1 %vm4555_vm0, %v4556_v1  ;;  %3864 = vmatpush3.bf16.msra.mxu1 %v3863_v63 }
 0x510   : > { %3865 = vmatprep.subr.bf16.mxu1 %v4554_v0 }
 0x513   : > { %3867 = vmatpush3.bf16.msra.mxu1 %v3866_v4 }
 0x514   : > { %3874 = vmatprep.subr.bf16.mxu1 %v4554_v0 }
 0x570   : > { %v1356_v28 = vpop.f32.mrb[8].mxu1 }
 0x571   : > { %1360 = vst.msk [vmem:[#allocation2] sm:$0xff] %vm1197_vm2, %v1356_v28  ;;  %v3666_v29 = vpop.f32.mrb[9].mxu1 }
 0x5d9   : > { %v1525_v36 = vpop.f32.mrb[10].mxu1 }
 0x5da   : > { %1530 = vrot.lane.b32.xlu1 %v1525_v36, %s5591_s10  ;;  %v3676_v37 = vpop.f32.mrb[11].mxu1  ;;  %s5668_s10 = sld [smem:[#allocation53_spill]] }
 0x5dd   : > { %v1698_v38 = vpop.f32.mrb[12].mxu1 }
 0x5de   : > { %1703 = vrot.lane.b32.xlu0 %v1698_v38, %s5590_s4  ;;  %v3686_v39 = vpop.f32.mrb[13].mxu1  ;;  %s5662_s4 = sld [smem:[#allocation48_spill]] }
 0x5e1   : > { %v1871_v40 = vpop.f32.mrb[14].mxu1 }
 0x5e2   : > { %1876 = vrot.lane.b32.xlu1 %v1871_v40, %s5589_s8  ;;  %v3696_v41 = vpop.f32.mrb[15].mxu1 }
 0x5e4   : > { %s5663_s8 = smov %s5662_s4  ;;  %v1994_v17 = vld [vmem:[%s5662_s4] sm:$0xff]  ;;  %s5671_s4 = sld [smem:[#allocation35_spill]] }
 0x5e5   : > { %v1995_v18 = vld [vmem:[%s5663_s8 + $0x8] sm:$0xff]  ;;  %v1996_v19 = vld [vmem:[%s5663_s8 + $0x10] sm:$0xff]  ;;  %v1997_v21 = vld [vmem:[%s5663_s8 + $0x18] sm:$0xff] }
 0x5e6   : > { %v3875_v20 = vpack.c.bf16 %v1995_v18, %v1994_v17  ;;  %v3878_v22 = vpack.c.bf16 %v1997_v21, %v1996_v19 }
 0x5ea   : > { %p5675_p5 = scmp.ne.s32.totalorder %s5671_s4, 0 }
 0x64c   : > { %v1531_v42 = vpop.permute.xlu1 %1530 }
 0x64d   : > { %1534 = vst.msk [vmem:[#allocation2] sm:$0xff] %vm1533_vm4, %v1531_v42 }
 0x650   : > { %v1704_v43 = vpop.permute.xlu0 %1703 }
 0x651   : > { %1707 = vst.msk [vmem:[#allocation2] sm:$0xff] %vm1706_vm5, %v1704_v43 }
 0x654   : > { %v1877_v44 = vpop.permute.xlu1 %1876 }
 0x655   : > { %1880 = vst.msk [vmem:[#allocation2] sm:$0xff] %vm1879_vm6, %v1877_v44 }
 0x65c   : > { %v1881_v45 = vld [vmem:[#allocation2] sm:$0xff] }
 0x65d   : > { %3706 = vmatmul.mubr.msk.f32.vlgmr.msra.gmra.mrb[6].mxu0 %vm982_vm1, %v1881_v45 }
 0x65e   : > { %3727 = vmatprep.mubr.msk.f32.mxu0 %vm4555_vm0, %v4556_v1 }
 0x730   : > { %v1953_v46 = vpop.f32.mrb[6].mxu0 }
 0x731   : > { %v1954_v47 = vadd.f32 %v1953_v46, %v5156_v10  ;;  %v3707_v48 = vpop.f32.mrb[7].mxu0  ;;  %v1991_v10 = vld [vmem:[%s5661_s6 + $0x8] sm:$0xff]  ;;  %s5674_s6 = sld [smem:[#allocation57_spill]] }
 0x732   : > { %v3869_v56 = vpack.c.bf16 %v1991_v10, %v1990_v55 }
 0x733   : > { %v1957_v49 = vsel %vm982_vm1, %v1954_v47, 0.0 }
 0x734   : > { %1958 = vadd.xlane.f32.xlu0 %v1957_v49  ;;  %3870 = vmatpush3.bf16.msra.mxu0 %v3869_v56 }
 0x735   : > { %3871 = vmatprep.subr.bf16.mxu0 %v4554_v0 }
 0x738   : > { %3873 = vmatpush3.bf16.msra.mxu0 %v3872_v59 }
 0x739   : > { %3741 = vmatprep.subr.mxu0 %v4556_v1 }
 0x73b   : > { %3728 = vmatmul.mubr.msk.f32.vlgmr.msra.gmra.mrb[8].mxu0 %vm982_vm1, %v964_v60 }
 0x73c   : > { %3743 = vmatprep.mubr.msk.f32.mxu0 %vm4555_vm0, %v4556_v1 }
 0x7c1   : > { %v1959_v50 = vpop.xlane.xlu0 %1958 }
 0x7c2   : > { %v1961_v51 = vmul.f32 0.03125, %v1959_v50 }
 0x7c4   : > { %v1962_v52 = vsub.f32 %v1954_v47, %v1961_v51 }
 0x7c6   : > { %v1963_v53 = vmul.f32 %v1962_v52, %v1962_v52 }
 0x7c8   : > { %v1964_v54 = vsel %vm982_vm1, %v1963_v53, 0.0 }
 0x7c9   : > { %1965 = vadd.xlane.f32.xlu1 %v1964_v54 }
 0x80e   : > { %v2144_v15 = vpop.f32.mrb[8].mxu0 }
 0x80f   : > { %2387 = vrot.lane.b32.xlu0 %v2144_v15, %s4558_s20  ;;  %v3729_v16 = vpop.f32.mrb[9].mxu0  ;;  %3742 = vmatpush3.xpose.msk.msra.mxu0 %vm1197_vm2, %v2144_v15 }
 0x810   : > { %3751 = vmatprep.subr.mxu0 %v4556_v1 }
 0x813   : > { %2560 = vrot.lane.b32.xlu0 %v2144_v15, %s4557_s29 }
 0x817   : > { %2732 = vrot.lane.b32.xlu0 %v2144_v15, %s4559_s23 }
 0x856   : > { %v1966_v5 = vpop.xlane.xlu1 %1965 }
 0x857   : > { %v1967_v6 = vmul.f32 0.03125, %v1966_v5 }
 0x859   : > { %v1968_v7 = vadd.f32 1e-05, %v1967_v6 }
 0x85b   : > { %4080 = vrsqrt.f32 %v1968_v7 }
 0x865   : > { %v4081_v8 = vpop.eup %4080 }
 0x866   : > { %v1970_v11 = vmul.f32 %v4081_v8, %v1962_v52 }
 0x868   : > { %v1977_v13 = vmul.f32 %v3501_v9, %v1970_v11 }
 0x86a   : > { %v5306_v14 = vadd.f32 %v3502_v12, %v1977_v13 }
 0x86c   : > { %3717 = vmatmul.mubr.msk.f32.vlgmr.msra.gmra.mrb[16].mxu1 %vm982_vm1, %v5306_v14 }
 0x86d   : > { %3738 = vmatprep.mubr.msk.f32.mxu1 %vm4555_vm0, %v4556_v1  ;;  %3876 = vmatpush3.bf16.msra.mxu1 %v3875_v20 }
 0x86e   : > { %3877 = vmatprep.subr.bf16.mxu1 %v4554_v0 }
 0x871   : > { %3879 = vmatpush3.bf16.msra.mxu1 %v3878_v22 }
 0x872   : > { %3746 = vmatprep.subr.mxu1 %v4556_v1 }
 0x874   : > { %3739 = vmatmul.mubr.msk.f32.vlgmr.msra.gmra.mrb[18].mxu1 %vm982_vm1, %v963_v26 }
 0x875   : > { %3748 = vmatprep.mubr.msk.f32.mxu1 %vm4555_vm0, %v4556_v1 }
 0x881   : > { %v2388_v25 = vpop.permute.xlu0 %2387 }
 0x885   : > { %v2561_v27 = vpop.permute.xlu0 %2560 }
 0x889   : > { %v2733_v30 = vpop.permute.xlu0 %2732 }
 0x93f   : > { %v2071_v23 = vpop.f32.mrb[16].mxu1 }
 0x940   : > { %2385 = vrot.lane.b32.xlu1 %v2071_v23, %s4558_s20  ;;  %v3718_v24 = vpop.f32.mrb[17].mxu1  ;;  %3744 = vmatmul.mubr.msk.f32.vlgmr.msra.gmra.mrb[10].mxu0 %vm1197_vm2, %v2071_v23 }
 0x941   : > { %3752 = vmatpush3.xpose.msk.msra.mxu0 %vm1197_vm2, %v2388_v25  ;;  %3753 = vmatprep.mubr.msk.f32.mxu0 %vm4555_vm0, %v4556_v1 }
 0x942   : > { %3761 = vmatprep.subr.mxu0 %v4556_v1 }
 0x944   : > { %2558 = vrot.lane.b32.xlu1 %v2071_v23, %s4557_s29 }
 0x947   : > { %v2217_v38 = vpop.f32.mrb[18].mxu1 }
 0x948   : > { %2730 = vrot.lane.b32.xlu1 %v2071_v23, %s4559_s23  ;;  %v3740_v39 = vpop.f32.mrb[19].mxu1  ;;  %3747 = vmatpush3.msra.mxu1 %v2217_v38 }
 0x949   : > { %3756 = vmatprep.subr.mxu1 %v4556_v1 }
 0x9b2   : > { %v2386_v28 = vpop.permute.xlu1 %2385 }
 0x9b3   : > { %3754 = vmatmul.mubr.msk.f32.vlgmr.msra.gmra.mrb[12].mxu0 %vm1197_vm2, %v2386_v28 }
 0x9b4   : > { %3762 = vmatpush3.xpose.msk.msra.mxu0 %vm1197_vm2, %v2561_v27  ;;  %3763 = vmatprep.mubr.msk.f32.mxu0 %vm4555_vm0, %v4556_v1 }
 0x9b5   : > { %3771 = vmatprep.subr.mxu0 %v4556_v1 }
 0x9b6   : > { %v2559_v29 = vpop.permute.xlu1 %2558 }
 0x9b7   : > { %3764 = vmatmul.mubr.msk.f32.vlgmr.msra.gmra.mrb[14].mxu0 %vm1197_vm2, %v2559_v29 }
 0x9b8   : > { %3772 = vmatpush3.xpose.msk.msra.mxu0 %vm1197_vm2, %v2733_v30  ;;  %3773 = vmatprep.mubr.msk.f32.mxu0 %vm4555_vm0, %v4556_v1 }
 0x9b9   : > { %3880 = vmatprep.subr.bf16.mxu0 %v4554_v0 }
 0x9ba   : > { %v2731_v31 = vpop.permute.xlu1 %2730 }
 0x9bb   : > { %3774 = vmatmul.mubr.msk.f32.vlgmr.msra.gmra.mrb[16].mxu0 %vm1197_vm2, %v2731_v31  ;;  %v1998_v31 = vld [vmem:[#allocation17] sm:$0xff] }
 0x9bc   : > { %3789 = vmatprep.mubr.msk.f32.mxu0 %vm4555_vm0, %v4556_v1 }
 0xa13   : > { %v2294_v33 = vpop.f32.mrb[10].mxu0 }
 0xa14   : > { %v2298_v34 = vsel %vm2221_vm7, -1e+20, %v2294_v33  ;;  %v3745_v35 = vpop.f32.mrb[11].mxu0  ;;  %v3881_v33 = vpack.c.bf16 %v1999_v32, %v1998_v31 }
 0xa15   : > { %v2299_v36 = vmul.f32 0.17677669, %v2298_v34  ;;  %v2000_v34 = vld [vmem:[#allocation17 + $0x10] sm:$0xff]  ;;  %v2001_v35 = vld [vmem:[#allocation17 + $0x18] sm:$0xff] }
 0xa16   : > { %3882 = vmatpush3.bf16.msra.mxu0 %v3881_v33 }
 0xa17   : > { %v2300_v37 = vsel %vm1197_vm2, %v2299_v36, -inf  ;;  %3883 = vmatprep.subr.bf16.mxu0 %v4554_v0 }
 0xa18   : > { %2301 = vmax.xlane.f32.xlu0 %v2300_v37 }
 0xa86   : > { %v2459_v40 = vpop.f32.mrb[12].mxu0 }
 0xa87   : > { %v2463_v41 = vsel %vm2221_vm7, -1e+20, %v2459_v40  ;;  %v3755_v42 = vpop.f32.mrb[13].mxu0 }
 0xa88   : > { %v2464_v43 = vmul.f32 0.17677669, %v2463_v41 }
 0xa8a   : > { %v2632_v44 = vpop.f32.mrb[14].mxu0  ;;  %v2465_v45 = vsel %vm1197_vm2, %v2464_v43, -inf }
 0xa8b   : > { %v2636_v46 = vsel %vm2221_vm7, -1e+20, %v2632_v44  ;;  %2466 = vmax.xlane.f32.xlu1 %v2465_v45  ;;  %v3765_v47 = vpop.f32.mrb[15].mxu0 }
 0xa8c   : > { %v2637_v48 = vmul.f32 0.17677669, %v2636_v46 }
 0xa8e   : > { %v2804_v49 = vpop.f32.mrb[16].mxu0  ;;  %v2638_v50 = vsel %vm1197_vm2, %v2637_v48, -inf }
 0xa8f   : > { %v2808_v51 = vsel %vm2221_vm7, -1e+20, %v2804_v49  ;;  %2639 = vmax.xlane.f32.xlu0 %v2638_v50  ;;  %v3775_v52 = vpop.f32.mrb[17].mxu0 }
 0xa90   : > { %v2809_v53 = vmul.f32 0.17677669, %v2808_v51 }
 0xa92   : > { %v2810_v54 = vsel %vm1197_vm2, %v2809_v53, -inf }
 0xa93   : > { %2811 = vmax.xlane.f32.xlu0 %v2810_v54 }
 0xa9c   : > { %2477 = vrot.lane.b32.xlu1 %v2217_v38, %s4558_s20  ;;  %s5667_s20 = smov 24  }
 0xaa5   : > { %v2302_v55 = vpop.xlane.xlu0 %2301 }
 0xaa6   : > { %v2303_v10 = vsub.f32 %v2299_v36, %v2302_v55  ;;  %v3884_v36 = vpack.c.bf16 %v2001_v35, %v2000_v34 }
 0xaa8   : > { %v2304_v56 = vmul.f32 1.442695, %v2303_v10  ;;  %3885 = vmatpush3.bf16.msra.mxu0 %v3884_v36  ;;  %v3005_v10 = vld [vmem:[#allocation21] sm:$0xff] }
 0xaa9   : > { %3892 = vmatprep.subr.bf16.mxu0 %v4554_v0  ;;  %v3523_v36 = vld [vmem:[%s5670_s5] ss:$0 sm:$0xff] }
 0xaaa   : > { %4082 = vpow2.f32 %v2304_v56  ;;  %v3006_v56 = vld [vmem:[#allocation21 + $0x8] sm:$0xff] }
 0xab4   : > { %v4083_v57 = vpop.eup %4082 }
 0xab5   : > { %v2306_v58 = vsel %vm1197_vm2, %v4083_v57, 0.0 }
 0xac0   : > { %2307 = vadd.xlane.f32.xlu1 %v2306_v58  ;;  %v3008_v58 = vld [vmem:[#allocation21 + $0x18] sm:$0xff] }
 0xb18   : > { %v2467_v59 = vpop.xlane.xlu1 %2466 }
 0xb19   : > { %v2468_v60 = vsub.f32 %v2464_v43, %v2467_v59  ;;  %v3090_v59 = vld [vmem:[%s5668_s10] sm:$0xff] }
 0xb1b   : > { %v2469_v61 = vmul.f32 1.442695, %v2468_v60  ;;  %v3091_v60 = vld [vmem:[%s5668_s10 + $0x8] sm:$0xff] }
 0xb1c   : > { %v2640_v62 = vpop.xlane.xlu0 %2639  ;;  %v2478_v13 = vpop.permute.xlu1 %2477 }
 0xb1d   : > { %4084 = vpow2.f32 %v2469_v61  ;;  %v2641_v63 = vsub.f32 %v2637_v48, %v2640_v62  ;;  %v3092_v61 = vld [vmem:[%s5668_s10 + $0x10] sm:$0xff]  ;;  %v3893_v62 = vpack.c.bf16 %v3091_v60, %v3090_v59 }
 0xb1f   : > { %v2642_v2 = vmul.f32 1.442695, %v2641_v63  ;;  %v3093_v63 = vld [vmem:[%s5668_s10 + $0x18] sm:$0xff] }
 0xb20   : > { %v2812_v3 = vpop.xlane.xlu0 %2811 }
 0xb21   : > { %4086 = vpow2.f32 %v2642_v2  ;;  %v2813_v4 = vsub.f32 %v2809_v53, %v2812_v3  ;;  %v3896_v2 = vpack.c.bf16 %v3093_v63, %v3092_v61  ;;  %v3094_v3 = vld [vmem:[%s5668_s10 + $0x20] sm:$0xff] }
 0xb23   : > { %v2814_v5 = vmul.f32 1.442695, %v2813_v4  ;;  %v3095_v4 = vld [vmem:[%s5668_s10 + $0x28] sm:$0xff] }
 0xb25   : > { %4088 = vpow2.f32 %v2814_v5  ;;  %v3899_v5 = vpack.c.bf16 %v3095_v4, %v3094_v3 }
 0xb27   : > { %v4085_v6 = vpop.eup %4084 }
 0xb28   : > { %v2471_v7 = vsel %vm1197_vm2, %v4085_v6, 0.0 }
 0xb29   : > { %2472 = vadd.xlane.f32.xlu0 %v2471_v7  ;;  %v3097_v7 = vld [vmem:[%s5668_s10 + $0x38] sm:$0xff] }
 0xb2b   : > { %v4087_v8 = vpop.eup %4086 }
 0xb2c   : > { %v2644_v9 = vsel %vm1197_vm2, %v4087_v8, 0.0 }
 0xb2d   : > { %2645 = vadd.xlane.f32.xlu1 %v2644_v9  ;;  %v3098_v9 = vld [vmem:[%s5668_s10 + $0x40] sm:$0xff] }
 0xb2f   : > { %v4089_v11 = vpop.eup %4088 }
 0xb30   : > { %v2816_v12 = vsel %vm1197_vm2, %v4089_v11, 0.0 }
 0xb31   : > { %2817 = vadd.xlane.f32.xlu0 %v2816_v12 }
 0xb3e   : > { %2821 = vrot.lane.b32.xlu1 %v2217_v38, %s4559_s23 }
 0xb47   : > { %2649 = vrot.lane.b32.xlu0 %v2217_v38, %s4557_s29  ;;  %s5666_s29 = smov 16  }
 0xb4d   : > { %v2308_v15 = vpop.xlane.xlu1 %2307 }
 0xb4e   : > { %4090 = vrcp.f32 %v2308_v15  ;;  %v3101_v15 = vld [vmem:[%s5668_s10 + $0x58] sm:$0xff] }
 0xb58   : > { %v4091_v16 = vpop.eup %4090 }
 0xb59   : > { %v2310_v17 = vmul.f32 %v4091_v16, %v4083_v57  ;;  %v3887_v57 = vpack.c.bf16 %v3006_v56, %v3005_v10 }
 0xb5b   : > { %3749 = vmatmul.mubr.msk.f32.vlgmr.msra.gmra.mrb[20].mxu1 %vm1197_vm2, %v2310_v17  ;;  %v3102_v17 = vld [vmem:[%s5668_s10 + $0x60] sm:$0xff] }
 0xb5c   : > { %3757 = vmatpush3.msra.mxu1 %v2478_v13  ;;  %3758 = vmatprep.mubr.msk.f32.mxu1 %vm4555_vm0, %v4556_v1  ;;  %v3100_v13 = vld [vmem:[%s5668_s10 + $0x50] sm:$0xff] }
 0xb5d   : > { %3766 = vmatprep.subr.mxu1 %v4556_v1  ;;  %v3908_v16 = vpack.c.bf16 %v3101_v15, %v3100_v13 }
 0xbb6   : > { %v2473_v18 = vpop.xlane.xlu0 %2472 }
 0xbb7   : > { %4092 = vrcp.f32 %v2473_v18  ;;  %v3103_v18 = vld [vmem:[%s5668_s10 + $0x68] sm:$0xff] }
 0xbba   : > { %v2646_v19 = vpop.xlane.xlu1 %2645 }
 0xbbb   : > { %4094 = vrcp.f32 %v2646_v19  ;;  %v3911_v19 = vpack.c.bf16 %v3103_v18, %v3102_v17 }
 0xbbe   : > { %v2818_v20 = vpop.xlane.xlu0 %2817  ;;  %v2822_v26 = vpop.permute.xlu1 %2821 }
 0xbbf   : > { %4096 = vrcp.f32 %v2818_v20 }
 0xbc1   : > { %v4093_v21 = vpop.eup %4092 }
 0xbc2   : > { %v2475_v22 = vmul.f32 %v4093_v21, %v4085_v6  ;;  %v2650_v23 = vpop.permute.xlu0 %2649  ;;  %v3096_v6 = vld [vmem:[%s5668_s10 + $0x30] sm:$0xff] }
 0xbc4   : > { %3759 = vmatmul.mubr.msk.f32.vlgmr.msra.gmra.mrb[22].mxu1 %vm1197_vm2, %v2475_v22 }
 0xbc5   : > { %v4095_v24 = vpop.eup %4094  ;;  %3767 = vmatpush3.msra.mxu1 %v2650_v23  ;;  %3768 = vmatprep.mubr.msk.f32.mxu1 %vm4555_vm0, %v4556_v1 }
 0xbc6   : > { %v2648_v25 = vmul.f32 %v4095_v24, %v4087_v8  ;;  %3776 = vmatprep.subr.mxu1 %v4556_v1  ;;  %v3902_v8 = vpack.c.bf16 %v3097_v7, %v3096_v6  ;;  %v3519_v24 = vld [vmem:[#allocation18] ss:$0 sm:$0xff] }
 0xbc8   : > { %3769 = vmatmul.mubr.msk.f32.vlgmr.msra.gmra.mrb[24].mxu1 %vm1197_vm2, %v2648_v25 }
 0xbc9   : > { %v4097_v27 = vpop.eup %4096  ;;  %3777 = vmatpush3.msra.mxu1 %v2822_v26  ;;  %3778 = vmatprep.mubr.msk.f32.mxu1 %vm4555_vm0, %v4556_v1  ;;  %v3520_v26 = vld [vmem:[#allocation20] ss:$0 sm:$0xff] }
 0xbca   : > { %v2820_v28 = vmul.f32 %v4097_v27, %v4089_v11  ;;  %3886 = vmatprep.subr.bf16.mxu1 %v4554_v0  ;;  %v3099_v11 = vld [vmem:[%s5668_s10 + $0x48] sm:$0xff] }
 0xbcb   : > { %v3905_v12 = vpack.c.bf16 %v3099_v11, %v3098_v9 }
 0xbcc   : > { %3779 = vmatmul.mubr.msk.f32.vlgmr.msra.gmra.mrb[26].mxu1 %vm1197_vm2, %v2820_v28 }
 0xbcd   : > { %3800 = vmatprep.mubr.msk.f32.mxu1 %vm4555_vm0, %v4556_v1  ;;  %3888 = vmatpush3.bf16.msra.mxu1 %v3887_v57 }
 0xbce   : > { %3889 = vmatprep.subr.bf16.mxu1 %v4554_v0 }
 0xc2e   : > { %v2380_v29 = vpop.f32.mrb[20].mxu1 }
 0xc2f   : > { %2384 = vst.msk [vmem:[#allocation2] sm:$0xff] %vm1197_vm2, %v2380_v29  ;;  %v3750_v30 = vpop.f32.mrb[21].mxu1  ;;  %v3104_v29 = vld [vmem:[%s5668_s10 + $0x70] sm:$0xff] }
 0xc97   : > { %v2549_v37 = vpop.f32.mrb[22].mxu1 }
 0xc98   : > { %2554 = vrot.lane.b32.xlu1 %v2549_v37, %s5665_s18  ;;  %v3760_v38 = vpop.f32.mrb[23].mxu1  ;;  %s3527_s18 = sshll.u32 %s4705_s26, 7  ;;  %s4563_s26 = smov [#allocation23]  }
 0xc99   : > { %s5481_s8 = scalar_lea.hbm %s5674_s6, %s3527_s18 }
 0xc9b   : > { %v2721_v39 = vpop.f32.mrb[24].mxu1 }
 0xc9c   : > { %2726 = vrot.lane.b32.xlu0 %v2721_v39, %s5666_s29  ;;  %v3770_v40 = vpop.f32.mrb[25].mxu1  ;;  %s5669_s29 = sld [smem:[#allocation52_spill]] }
 0xc9f   : > { %v2893_v41 = vpop.f32.mrb[26].mxu1 }
 0xca0   : > { %2898 = vrot.lane.b32.xlu1 %v2893_v41, %s5667_s20  ;;  %v3780_v42 = vpop.f32.mrb[27].mxu1 }
 0xca2   : > { %v3521_v31 = vld [vmem:[%s5669_s29] ss:$0 sm:$0xff]  ;;  %s961_s29 = scalar_lea.vmem [#allocation23], %s5092_s7  ;;  %s4452_s7 = sshll.u32 %s4563_s26, 4  ;;  %s4453_s7 = int_to_ptr.vmem [resolvable:$false] %s4452_s7 }
 0xca3   : > { %s3228_s20 = sshll.u32 %s961_s29, 4  ;;  %s5483_s20 = int_to_ptr.vmem [resolvable:$true] %s3228_s20 }
 0xca4   : > { %s4448_s3 = scalar_lea.vmem %s5483_s20, 128  ;;  %p4455_p1 = scmp.lt.s32.totalorder %s5483_s20, %s4453_s7 }
 0xca5   : > { %p4449_p6 = scmp.ne.s32.totalorder %s5483_s20, %s4448_s3 }
 0xca7   : > { %p4450_p3 = pnand %p4449_p6, %p5675_p5 }
 0xca9   : > { %p4451_p8 = pneg %p4450_p3 }
 0xd0a   : > { %v2555_v43 = vpop.permute.xlu1 %2554 }
 0xd0b   : > { %2557 = vst.msk [vmem:[#allocation2] sm:$0xff] %vm1533_vm4, %v2555_v43 }
 0xd0e   : > { %v2727_v44 = vpop.permute.xlu0 %2726 }
 0xd0f   : > { %2729 = vst.msk [vmem:[#allocation2] sm:$0xff] %vm1706_vm5, %v2727_v44 }
 0xd12   : > { %v2899_v45 = vpop.permute.xlu1 %2898 }
 0xd13   : > { %2901 = vst.msk [vmem:[#allocation2] sm:$0xff] %vm1879_vm6, %v2899_v45 }
 0xd1a   : > { %v2902_v46 = vld [vmem:[#allocation2] sm:$0xff] }
 0xd1b   : > { %3790 = vmatmul.mubr.msk.f32.vlgmr.msra.gmra.mrb[18].mxu0 %vm982_vm1, %v2902_v46 }
 0xd1c   : > { %3835 = vmatprep.mubr.msk.f32.mxu0 %vm4555_vm0, %v4556_v1  ;;  %v3007_v1 = vld [vmem:[#allocation21 + $0x10] sm:$0xff]  ;;  %3894 = vmatpush3.bf16.msra.mxu0 %v3893_v62 }
 0xd1d   : > { %3895 = vmatprep.subr.bf16.mxu0 %v4554_v0 }
 0xd20   : > { %3897 = vmatpush3.bf16.msra.mxu0 %v3896_v2 }
 0xd21   : > { %3898 = vmatprep.subr.bf16.mxu0 %v4554_v0 }
 0xd24   : > { %3900 = vmatpush3.bf16.msra.mxu0 %v3899_v5 }
 0xd25   : > { %3901 = vmatprep.subr.bf16.mxu0 %v4554_v0 }
 0xd28   : > { %3903 = vmatpush3.bf16.msra.mxu0 %v3902_v8 }
 0xd29   : > { %3904 = vmatprep.subr.bf16.mxu0 %v4554_v0 }
 0xd2c   : > { %3906 = vmatpush3.bf16.msra.mxu0 %v3905_v12 }
 0xd2d   : > { %3907 = vmatprep.subr.bf16.mxu0 %v4554_v0 }
 0xd30   : > { %3909 = vmatpush3.bf16.msra.mxu0 %v3908_v16 }
 0xd31   : > { %3910 = vmatprep.subr.bf16.mxu0 %v4554_v0 }
 0xd34   : > { %3912 = vmatpush3.bf16.msra.mxu0 %v3911_v19 }
 0xd35   : > { %3913 = vmatprep.subr.bf16.mxu0 %v4554_v0  ;;  %v3105_v0 = vld [vmem:[%s5668_s10 + $0x78] sm:$0xff] }
 0xd36   : > { %v3914_v30 = vpack.c.bf16 %v3105_v0, %v3104_v29 }
 0xd38   : > { %3915 = vmatpush3.bf16.msra.mxu0 %v3914_v30 }
 0xdee   : > { %v2974_v47 = vpop.f32.mrb[18].mxu0 }
 0xdef   : > { %v2975_v48 = vadd.f32 %v2974_v47, %v5306_v14  ;;  %v3791_v49 = vpop.f32.mrb[19].mxu0  ;;  %v3890_v14 = vpack.c.bf16 %v3008_v58, %v3007_v1 }
 0xdf1   : > { %v2978_v50 = vsel %vm982_vm1, %v2975_v48, 0.0  ;;  %3891 = vmatpush3.bf16.msra.mxu1 %v3890_v14 }
 0xdf2   : > { %2979 = vadd.xlane.f32.xlu0 %v2978_v50 }
 0xe7f   : > { %v2980_v51 = vpop.xlane.xlu0 %2979 }
 0xe80   : > { %v2981_v52 = vmul.f32 0.03125, %v2980_v51  ;;  %v3524_v51 = vld [vmem:[%s5672_s1] ss:$0 sm:$0xff]  ;;  %s4454_s1 = scalar_lea.vmem %s4453_s7, 256 }
 0xe81   : > { %p4456_p0 = scmp.lt.s32.totalorder %s4454_s1, %s4448_s3 }
 0xe82   : > { %v2982_v53 = vsub.f32 %v2975_v48, %v2981_v52 }
 0xe83   : > { %p4457_p12 = por %p4456_p0, %p4455_p1 }
 0xe84   : > { %v2983_v54 = vmul.f32 %v2982_v53, %v2982_v53 }
 0xe85   : > { %p4458_p10 = pnand %p4457_p12, %p4451_p8 }
 0xe86   : > { %v2984_v55 = vsel %vm982_vm1, %v2983_v54, 0.0 }
 0xe87   : > { %2985 = vadd.xlane.f32.xlu1 %v2984_v55 }
 0xf14   : > { %v2986_v20 = vpop.xlane.xlu1 %2985 }
 0xf15   : > { %v2987_v21 = vmul.f32 0.03125, %v2986_v20 }
 0xf17   : > { %v2988_v22 = vadd.f32 1e-05, %v2987_v21 }
 0xf19   : > { %4098 = vrsqrt.f32 %v2988_v22 }
 0xf23   : > { %v4099_v23 = vpop.eup %4098 }
 0xf24   : > { %v2990_v25 = vmul.f32 %v4099_v23, %v2982_v53  ;;  %v3525_v53 = vld [vmem:[%s5673_s28] ss:$0 sm:$0xff] }
 0xf26   : > { %v2997_v27 = vmul.f32 %v3519_v24, %v2990_v25 }
 0xf28   : > { %v3004_v28 = vadd.f32 %v3520_v26, %v2997_v27 }
 0xf2a   : > { %3801 = vmatmul.mubr.msk.f32.vlgmr.msra.gmra.mrb[28].mxu1 %vm982_vm1, %v3004_v28 }
 0xffd   : > { %v3085_v32 = vpop.f32.mrb[28].mxu1 }
 0xffe   : > { %v3086_v33 = vadd.f32 %v3521_v31, %v3085_v32  ;;  %v3802_v34 = vpop.f32.mrb[29].mxu1 }
0x1000   : > { %v3089_v35 = vmax.f32 %v3086_v33, 0.0 }
0x1002   : > { %3836 = vmatmul.mubr.f32.vlgmr.msra.gmra.mrb[20].mxu0 %v3089_v35 }
0x10d5   : > { %v3179_v37 = vpop.f32.mrb[20].mxu0 }
0x10d6   : > { %v3180_v38 = vadd.f32 %v3523_v36, %v3179_v37  ;;  %v3837_v39 = vpop.f32.mrb[21].mxu0 }
0x10d8   : > { %v3185_v40 = vadd.f32 %v3180_v38, %v3004_v28 }
0x10da   : > { %v3186_v41 = vsel %vm982_vm1, %v3185_v40, 0.0 }
0x10db   : > { %3187 = vadd.xlane.f32.xlu0 %v3186_v41 }
0x1168   : > { %v3188_v42 = vpop.xlane.xlu0 %3187 }
0x1169   : > { %v3189_v43 = vmul.f32 0.03125, %v3188_v42 }
0x116b   : > { %v3190_v44 = vsub.f32 %v3185_v40, %v3189_v43 }
0x116d   : > { %v3191_v45 = vmul.f32 %v3190_v44, %v3190_v44 }
0x116f   : > { %v3192_v46 = vsel %vm982_vm1, %v3191_v45, 0.0 }
0x1170   : > { %3193 = vadd.xlane.f32.xlu0 %v3192_v46 }
0x11fd   : > { %v3194_v47 = vpop.xlane.xlu0 %3193 }
0x11fe   : > { %v3195_v48 = vmul.f32 0.03125, %v3194_v47 }
0x1200   : > { %v3196_v49 = vadd.f32 1e-05, %v3195_v48 }
0x1202   : > { %4100 = vrsqrt.f32 %v3196_v49 }
0x120c   : > { %v4101_v50 = vpop.eup %4100 }
0x120d   : > { %v3198_v52 = vmul.f32 %v4101_v50, %v3190_v44 }
0x120f   : > { %v3205_v54 = vmul.f32 %v3524_v51, %v3198_v52 }
0x1211   : > { %v3212_v55 = vadd.f32 %v3525_v53, %v3205_v54 }
0x1213   : > { %3213 = vst.msk [vmem:[%s961_s29] sm:$0xff] %vm982_vm1, %v3212_v55 }
0x1214   : > { %4461 = shalt.err (!%p4458_p10)
}
0x1215   : > { %s4462_s21 = scalar_lea.hbm %s5481_s8, 128  ;;  %s4466_s28 = scalar_lea.hbm %s5674_s6, 256 }
0x1216   : > { %p4463_p11 = scmp.ne.s32.totalorder %s5481_s8, %s4462_s21  ;;  %p4467_p7 = scmp.lt.u32.totalorder %s5481_s8, %s5674_s6 }
0x1217   : > { %p4468_p13 = scmp.lt.u32.totalorder %s4466_s28, %s4462_s21  ;;  %p4470_p6 = scmp.lt.u32.totalorder %s4462_s21, %s5481_s8 }
0x1218   : > { %p4464_p2 = pnand %p4463_p11, %p5675_p5 }
0x1219   : > { %p4469_p9 = por %p4468_p13, %p4467_p7 }
0x121a   : > { %p4465_p4 = pneg %p4464_p2 }
0x121b   : > { %p4471_p3 = por %p4470_p6, %p4469_p9 }
0x121d   : > { %p4472_p8 = pnand %p4471_p3, %p4465_p4 }
0x121f   : > { %4475 = shalt.err (!%p4472_p8)
}
0x1220   : > { %3954 = dma.vmem_to_hbm [thread:$0]  (%p5675_p5), %s5483_s20, 128, %s5481_s8, %s3215_s22  }
0x1221 PF: > { %s5676_s23 = sld [smem:[#allocation32_spill]]  ;;  %s5677_s5 = sld [smem:[#allocation36_spill]] }
0x1222   : > { %p5679_p0 = scmp.ge.s32.totalorder %s4538_s25, 2 }
0x1227   : > { %s3240_s3 = sand.u32 1, %s5676_s23   ;;  %p5678_p1 = scmp.ne.s32.totalorder %s5677_s5, 0 }
0x1228   : > { %s3241_s26 = scalar_lea.sflag [#allocation5], %s3240_s3 }
0x1229   : > { %p3995_p12 = pnand %p5679_p0, %p5678_p1 }
0x122b   : > { %4521 = dma.done.wait (!%p3995_p12), %s3241_s26, 128  }
0x122c   : > { %4523 = vsyncadd (!%p3995_p12), %s3241_s26, 4294967168  ;;  %s5680_s25 = sld [smem:[#allocation33_spill]]  ;;  %s5681_s7 = sld [smem:[#allocation34_spill]] }
0x122d   : > { %s5682_s4 = smov %s4530_s30  ;;  %s5683_s30 = smov %s4534_s24 }
0x1232   : > { %p46_p10 = scmp.ge.s32.totalorder %s5680_s25, 4   ;;  %s5684_s24 = smov %s5681_s7 }
0x1234   :  { %48 = sbr.rel (!%p46_p10) target bundleno = 35 (0x23), region = 233 }
0x123b   :  { %3246 = vsyncpa [#allocation4], 1 }
0x123c   :  { %3248 = vsyncpa [#allocation4 + $0x1], 1 }
0x123d   :  { %3249 = vsyncpa [#allocation7], 1 }
0x123e   :  { %3251 = vsyncpa [#allocation7 + $0x1], 1 }
0x123f   :  { %3252 = vsyncpa [#allocation10], 1 }
0x1240   :  { %3254 = vsyncpa [#allocation10 + $0x1], 1 }
0x1241   :  { %3255 = vsyncpa [#allocation13], 1 }
0x1242   :  { %3256 = vsyncpa [#allocation16], 1 }
0x1243   :  { %3257 = vsyncpa [#allocation19], 1 }
0x1244   :  { %3258 = vsyncpa [#allocation22], 1 }
0x1245   :  { %3259 = vsyncpa [#allocation5], 1 }
0x1246   :  { %3261 = vsyncpa [#allocation5 + $0x1], 1 }

</bundles_post_ra>
